<compile_context>
chip_gen: v7x
topology: tpu7x:2x2x1
jax: 0.10.0
libtpu: 0.0.40
codegen_flags: <defaults>
</compile_context>

<pallas_src>
import jax
import jax.numpy as jnp
from jax.experimental import pallas as pl
from jax.experimental.pallas import tpu as pltpu

IN_DIM = 64
HIDDEN = 5120
OUT_DIM = 50
OUT_PAD = 128          # lane-dense padded output width
MAX_TB = 256           # max batch-tile rows per grid step


def _decoder_kernel(x_ref, w1_ref, b1_ref, w2_ref, b2_ref, o_ref):
    # h = relu(x @ W1 + b1)                         (TB, HIDDEN), f32 accum
    h = jnp.dot(x_ref[...], w1_ref[...], preferred_element_type=jnp.float32)
    h = jnp.maximum(h + b1_ref[...], 0.0)
    # TODO(synk): Dropout(0.25) applied as eval-mode identity only.
    # out = h @ W2 + b2                             (TB, OUT_PAD), f32 accum
    out = jnp.dot(h.astype(w2_ref.dtype), w2_ref[...],
                  preferred_element_type=jnp.float32)
    o_ref[...] = (out + b2_ref[...]).astype(o_ref.dtype)


def rna_model_forward(src, w1, b1, w2, b2):
    """src: (B, 64) f32, w1: (64, 5120), b1: (5120,), w2: (5120, 50), b2: (50,)
    -> (B, 50) f32."""
    B = src.shape[0]

    # Batch tile: multiple of 8 sublanes, capped at MAX_TB.
    tb = min(MAX_TB, ((B + 7) // 8) * 8)
    n_tiles = (B + tb - 1) // tb
    Bp = n_tiles * tb

    # bf16 inputs / weights (f32 accumulation inside the kernel).
    x = src.astype(jnp.bfloat16)
    if Bp != B:
        x = jnp.pad(x, ((0, Bp - B), (0, 0)))
    w1_bf = w1.astype(jnp.bfloat16)
    # Lane-pad the 50-wide output to 128 with zero columns (contribute nothing).
    w2_bf = jnp.pad(w2, ((0, 0), (0, OUT_PAD - OUT_DIM))).astype(jnp.bfloat16)
    b1_2d = b1.reshape(1, HIDDEN).astype(jnp.float32)
    b2_2d = jnp.pad(b2.reshape(1, OUT_DIM),
                    ((0, 0), (0, OUT_PAD - OUT_DIM))).astype(jnp.float32)

    out = pl.pallas_call(
        _decoder_kernel,
        out_shape=jax.ShapeDtypeStruct((Bp, OUT_PAD), jnp.float32),
        grid=(n_tiles,),
        in_specs=[
            pl.BlockSpec((tb, IN_DIM), lambda i: (i, 0)),       # x tile
            pl.BlockSpec((IN_DIM, HIDDEN), lambda i: (0, 0)),   # W1 (resident)
            pl.BlockSpec((1, HIDDEN), lambda i: (0, 0)),        # b1 (resident)
            pl.BlockSpec((HIDDEN, OUT_PAD), lambda i: (0, 0)),  # W2 (resident)
            pl.BlockSpec((1, OUT_PAD), lambda i: (0, 0)),       # b2 (resident)
        ],
        out_specs=pl.BlockSpec((tb, OUT_PAD), lambda i: (i, 0)),
        compiler_params=pltpu.CompilerParams(
            dimension_semantics=("parallel",),
        ),
    )(x, w1_bf, b1_2d, w2_bf, b2_2d)

    return out[:B, :OUT_DIM]


def _reference_forward(src, w1, b1, w2, b2):
    # Same bf16-weight / f32-accumulate math as the kernel, in plain JAX.
    h = jnp.dot(src.astype(jnp.bfloat16), w1.astype(jnp.bfloat16),
                preferred_element_type=jnp.float32) + b1
    h = jnp.maximum(h, 0.0)
    out = jnp.dot(h.astype(jnp.bfloat16), w2.astype(jnp.bfloat16),
                  preferred_element_type=jnp.float32) + b2
    return out


if __name__ == "__main__":
    key = jax.random.PRNGKey(0)
    k_x, k_w1, k_b1, k_w2, k_b2 = jax.random.split(key, 5)

    B = 8
    src = jax.random.normal(k_x, (B, IN_DIM), dtype=jnp.float32)

    # Deterministic parameter init (mimics nn.Linear's uniform(-1/sqrt(fan_in), ...)).
    lim1 = 1.0 / (IN_DIM ** 0.5)
    w1 = jax.random.uniform(k_w1, (IN_DIM, HIDDEN), jnp.float32, -lim1, lim1)
    b1 = jax.random.uniform(k_b1, (HIDDEN,), jnp.float32, -lim1, lim1)
    lim2 = 1.0 / (HIDDEN ** 0.5)
    w2 = jax.random.uniform(k_w2, (HIDDEN, OUT_DIM), jnp.float32, -lim2, lim2)
    b2 = jax.random.uniform(k_b2, (OUT_DIM,), jnp.float32, -lim2, lim2)

    out = rna_model_forward(src, w1, b1, w2, b2)
    out = jax.block_until_ready(out)

    ref = _reference_forward(src, w1, b1, w2, b2)
    assert out.shape == (B, OUT_DIM)
    assert jnp.allclose(out, ref, atol=5e-3, rtol=5e-3), "mismatch vs reference"

    print("KERNEL_OK")
</pallas_src>

<mosaic_0001>
module attributes {stable_mosaic.version = 11 : i64} {
  func.func @_decoder_kernel(%arg0: i32, %arg1: memref<8x64xbf16, #tpu.memory_space<vmem>>, %arg2: memref<64x5120xbf16, #tpu.memory_space<vmem>>, %arg3: memref<1x5120xf32, #tpu.memory_space<vmem>>, %arg4: memref<5120x128xbf16, #tpu.memory_space<vmem>>, %arg5: memref<1x128xf32, #tpu.memory_space<vmem>>, %arg6: memref<8x128xf32, #tpu.memory_space<vmem>>) attributes {dimension_semantics = [#tpu.dimension_semantics<parallel>], iteration_bounds = array<i64: 1>, scalar_prefetch = 0 : i64, scratch_operands = 0 : i64, tpu.core_type = #tpu.core_type<tc>, window_params = [{transform_indices = @transform_0, window_bounds = array<i64: 8, 64>}, {pipeline_mode = #tpu.pipeline_mode<synchronous>, transform_indices = @transform_1, window_bounds = array<i64: 64, 5120>}, {pipeline_mode = #tpu.pipeline_mode<synchronous>, transform_indices = @transform_2, window_bounds = array<i64: 1, 5120>}, {pipeline_mode = #tpu.pipeline_mode<synchronous>, transform_indices = @transform_3, window_bounds = array<i64: 5120, 128>}, {pipeline_mode = #tpu.pipeline_mode<synchronous>, transform_indices = @transform_4, window_bounds = array<i64: 1, 128>}, {transform_indices = @transform_5, window_bounds = array<i64: 8, 128>}]} {
    %c0 = arith.constant 0 : index
    %c0_0 = arith.constant 0 : index
    %0 = vector.load %arg1[%c0, %c0_0] : memref<8x64xbf16, #tpu.memory_space<vmem>>, vector<8x64xbf16>
    %c0_1 = arith.constant 0 : index
    %c0_2 = arith.constant 0 : index
    %1 = vector.load %arg2[%c0_1, %c0_2] : memref<64x5120xbf16, #tpu.memory_space<vmem>>, vector<64x5120xbf16>
    %cst = arith.constant dense<0.000000e+00> : vector<8x5120xf32>
    %2 = tpu.matmul %0, %1, %cst {dimension_numbers = #tpu.dot_dimension_numbers<[1], [0], [0], [1], [0, 0, 1, 1], [], []>} : vector<8x64xbf16>, vector<64x5120xbf16>, vector<8x5120xf32> -> vector<8x5120xf32>
    %c0_3 = arith.constant 0 : index
    %c0_4 = arith.constant 0 : index
    %3 = vector.load %arg3[%c0_3, %c0_4] : memref<1x5120xf32, #tpu.memory_space<vmem>>, vector<1x5120xf32>
    %4 = vector.broadcast %3 : vector<1x5120xf32> to vector<8x5120xf32>
    %5 = arith.addf %2, %4 : vector<8x5120xf32>
    %cst_5 = arith.constant 0.000000e+00 : f32
    %6 = vector.broadcast %cst_5 : f32 to vector<8x5120xf32>
    %7 = arith.maximumf %5, %6 : vector<8x5120xf32>
    %8 = arith.truncf %7 : vector<8x5120xf32> to vector<8x5120xbf16>
    %c0_6 = arith.constant 0 : index
    %c0_7 = arith.constant 0 : index
    %9 = vector.load %arg4[%c0_6, %c0_7] : memref<5120x128xbf16, #tpu.memory_space<vmem>>, vector<5120x128xbf16>
    %cst_8 = arith.constant dense<0.000000e+00> : vector<8x128xf32>
    %10 = tpu.matmul %8, %9, %cst_8 {dimension_numbers = #tpu.dot_dimension_numbers<[1], [0], [0], [1], [0, 0, 1, 1], [], []>} : vector<8x5120xbf16>, vector<5120x128xbf16>, vector<8x128xf32> -> vector<8x128xf32>
    %c0_9 = arith.constant 0 : index
    %c0_10 = arith.constant 0 : index
    %11 = vector.load %arg5[%c0_9, %c0_10] : memref<1x128xf32, #tpu.memory_space<vmem>>, vector<1x128xf32>
    %12 = vector.broadcast %11 : vector<1x128xf32> to vector<8x128xf32>
    %13 = arith.addf %10, %12 : vector<8x128xf32>
    %c0_11 = arith.constant 0 : index
    %c0_12 = arith.constant 0 : index
    %14 = vector.load %arg6[%c0_11, %c0_12] : memref<8x128xf32, #tpu.memory_space<vmem>>, vector<8x128xf32>
    tpu.vector_store %arg6[%c0_11, %c0_12], %13 {strides = array<i32>} : memref<8x128xf32, #tpu.memory_space<vmem>>, vector<8x128xf32>,
    return
  }
  func.func @transform_0(%arg0: i32) -> (i32, i32) {
    %c0_i32 = arith.constant 0 : i32
    %c0_i32_0 = arith.constant 0 : i32
    return %arg0, %c0_i32 : i32, i32
  }
  func.func @transform_1(%arg0: i32) -> (i32, i32) {
    %c0_i32 = arith.constant 0 : i32
    %c0_i32_0 = arith.constant 0 : i32
    %c0_i32_1 = arith.constant 0 : i32
    return %c0_i32, %c0_i32_0 : i32, i32
  }
  func.func @transform_2(%arg0: i32) -> (i32, i32) {
    %c0_i32 = arith.constant 0 : i32
    %c0_i32_0 = arith.constant 0 : i32
    %c0_i32_1 = arith.constant 0 : i32
    return %c0_i32, %c0_i32_0 : i32, i32
  }
  func.func @transform_3(%arg0: i32) -> (i32, i32) {
    %c0_i32 = arith.constant 0 : i32
    %c0_i32_0 = arith.constant 0 : i32
    %c0_i32_1 = arith.constant 0 : i32
    return %c0_i32, %c0_i32_0 : i32, i32
  }
  func.func @transform_4(%arg0: i32) -> (i32, i32) {
    %c0_i32 = arith.constant 0 : i32
    %c0_i32_0 = arith.constant 0 : i32
    %c0_i32_1 = arith.constant 0 : i32
    return %c0_i32, %c0_i32_0 : i32, i32
  }
  func.func @transform_5(%arg0: i32) -> (i32, i32) {
    %c0_i32 = arith.constant 0 : i32
    %c0_i32_0 = arith.constant 0 : i32
    return %arg0, %c0_i32 : i32, i32
  }
}

</mosaic_0001>

<bundles_post_ra>
// kernel: tpu_custom_call.1
= control target key start
LH: loop header
LB: loop body
LE: loop exit
PB: predicated region body
PF: predicated region fallthrough
CT: control target
= control target key end

     0   :  { %10 = vsyncpa [#allocation3], 0  ;;  %s7340_s0 = inlined_call_operand.hbm [shape: bf16[8,64], index: 0, kind: input, shape index: {}]   ;;  %s7341_s1 = inlined_call_operand.hbm [shape: bf16[64,5120], index: 1, kind: input, shape index: {}]   ;;  %s7342_s2 = inlined_call_operand.hbm [shape: f32[1,5120], index: 2, kind: input, shape index: {}]   ;;  %s7343_s3 = inlined_call_operand.hbm [shape: bf16[5120,128], index: 3, kind: input, shape index: {}]   ;;  %s7344_s4 = inlined_call_operand.hbm [shape: f32[1,128], index: 4, kind: input, shape index: {}]   ;;  %s7345_s5 = inlined_call_operand.hbm [shape: f32[8,128], index: 5, kind: output, shape index: {}]  }
   0x1   :  { %11 = vsyncpa [#allocation6], 0 }
   0x2   :  { %12 = vsyncpa [#allocation9], 0 }
   0x3   :  { %13 = vsyncpa [#allocation4], 0  ;;  %s6957_s18 = smov [#allocation5]   ;;  %s6817_s22 = scalar_lea.hbm %s7341_s1, 20480 }
   0x4   :  { %s29_s19 = sshll.u32 %s6957_s18, 4  ;;  %p6818_p0 = scmp.ne.s32.totalorder %s7341_s1, %s6817_s22  ;;  %s30_s19 = int_to_ptr.vmem [resolvable:$true] %s29_s19 }
   0x5   :  { %p6821_p1 = scmp.lt.u32.totalorder %s6817_s22, %s7341_s1 }
   0x7   :  { %p6823_p2 = pnand %p6821_p1, %p6818_p0 }
   0x9   :  { %6826 = shalt.err (!%p6823_p2)
}
   0xa   :  { %s6827_s27 = scalar_lea.vmem %s30_s19, 20480  ;;  %p6832_p4 = scmp.lt.s32.totalorder %s30_s19, %s30_s19 }
   0xb   :  { %p6828_p3 = scmp.ne.s32.totalorder %s30_s19, %s6827_s27  ;;  %p6833_p5 = scmp.lt.s32.totalorder %s6827_s27, %s6827_s27 }
   0xd   :  { %p6834_p6 = por %p6833_p5, %p6832_p4 }
   0xf   :  { %p6835_p7 = pnand %p6834_p6, %p6828_p3 }
  0x11   :  { %6838 = shalt.err (!%p6835_p7)
}
  0x12   :  { %s6958_s28 = smov 2560   ;;  %s6959_s29 = smov 160  }
  0x13   :  { %35 = dma.hbm_to_vmem [thread:$0]  %s7341_s1, 20480, %s30_s19, [#allocation6], %s6958_s28, %s6958_s28, %s6959_s29  }
  0x14   :  { %s6960_s7 = smov [#allocation8]   ;;  %s6839_s11 = scalar_lea.hbm %s7343_s3, 40960 }
  0x15   :  { %s51_s8 = sshll.u32 %s6960_s7, 4  ;;  %p6840_p8 = scmp.ne.s32.totalorder %s7343_s3, %s6839_s11  ;;  %s52_s8 = int_to_ptr.vmem [resolvable:$true] %s51_s8 }
  0x16   :  { %p6843_p9 = scmp.lt.u32.totalorder %s6839_s11, %s7343_s3 }
  0x18   :  { %p6845_p10 = pnand %p6843_p9, %p6840_p8 }
  0x1a   :  { %6848 = shalt.err (!%p6845_p10)
}
  0x1b   :  { %s6849_s16 = scalar_lea.vmem %s52_s8, 40960  ;;  %p6854_p12 = scmp.lt.s32.totalorder %s52_s8, %s52_s8 }
  0x1c   :  { %p6850_p11 = scmp.ne.s32.totalorder %s52_s8, %s6849_s16  ;;  %p6855_p13 = scmp.lt.s32.totalorder %s6849_s16, %s6849_s16 }
  0x1e   :  { %p6856_p0 = por %p6855_p13, %p6854_p12 }
  0x20   :  { %p6857_p1 = pnand %p6856_p0, %p6850_p11 }
  0x22   :  { %6860 = shalt.err (!%p6857_p1)
}
  0x23   :  { %s6961_s1 = smov 64   ;;  %s6962_s17 = smov 4  }
  0x24   :  { %57 = dma.hbm_to_vmem [thread:$0]  %s7343_s3, 40960, %s52_s8, [#allocation9], %s6961_s1, %s6961_s1, %s6962_s17  }
  0x25   :  { %s6963_s20 = smov [#allocation2]   ;;  %s6964_s22 = smov [#allocation7]  }
  0x26   :  { %s20_s21 = sshll.u32 %s6963_s20, 4  ;;  %s42_s23 = sshll.u32 %s6964_s22, 4  ;;  %s21_s21 = int_to_ptr.vmem [resolvable:$true] %s20_s21  ;;  %s43_s23 = int_to_ptr.vmem [resolvable:$true] %s42_s23 }
  0x27   :  { %s6861_s26 = scalar_lea.hbm %s7340_s0, 64 }
  0x28   :  { %p6862_p2 = scmp.ne.s32.totalorder %s7340_s0, %s6861_s26  ;;  %p6865_p3 = scmp.lt.u32.totalorder %s6861_s26, %s7340_s0 }
  0x2a   :  { %p6867_p4 = pnand %p6865_p3, %p6862_p2 }
  0x2c   :  { %6870 = shalt.err (!%p6867_p4)
}
  0x2d   :  { %s6871_s3 = scalar_lea.vmem %s21_s21, 64  ;;  %p6876_p6 = scmp.lt.s32.totalorder %s21_s21, %s21_s21 }
  0x2e   :  { %p6872_p5 = scmp.ne.s32.totalorder %s21_s21, %s6871_s3  ;;  %p6877_p7 = scmp.lt.s32.totalorder %s6871_s3, %s6871_s3 }
  0x30   :  { %p6878_p8 = por %p6877_p7, %p6876_p6 }
  0x32   :  { %p6879_p9 = pnand %p6878_p8, %p6872_p5 }
  0x34   :  { %6882 = shalt.err (!%p6879_p9)
}
  0x35   :  { %23 = dma.hbm_to_vmem [thread:$0]  %s7340_s0, 64, %s21_s21, [#allocation3]  }
  0x36   :  { %s6883_s10 = scalar_lea.hbm %s7342_s2, 640 }
  0x37   :  { %p6884_p10 = scmp.ne.s32.totalorder %s7342_s2, %s6883_s10  ;;  %p6887_p11 = scmp.lt.u32.totalorder %s6883_s10, %s7342_s2 }
  0x39   :  { %p6889_p12 = pnand %p6887_p11, %p6884_p10 }
  0x3b   :  { %6892 = shalt.err (!%p6889_p12)
}
  0x3c   :  { %s6893_s15 = scalar_lea.vmem %s43_s23, 640  ;;  %p6898_p0 = scmp.lt.s32.totalorder %s43_s23, %s43_s23 }
  0x3d   :  { %p6894_p13 = scmp.ne.s32.totalorder %s43_s23, %s6893_s15  ;;  %p6899_p1 = scmp.lt.s32.totalorder %s6893_s15, %s6893_s15 }
  0x3f   :  { %p6900_p2 = por %p6899_p1, %p6898_p0 }
  0x41   :  { %p6901_p3 = pnand %p6900_p2, %p6894_p13 }
  0x43   :  { %6904 = shalt.err (!%p6901_p3)
}
  0x44   :  { %45 = dma.hbm_to_vmem [thread:$0]  %s7342_s2, 640, %s43_s23, [#allocation6]  }
  0x45   :  { %s6965_s1 = smov [#allocation10]   ;;  %s6905_s20 = scalar_lea.hbm %s7344_s4, 16 }
  0x46   :  { %s64_s17 = sshll.u32 %s6965_s1, 4  ;;  %p6906_p4 = scmp.ne.s32.totalorder %s7344_s4, %s6905_s20  ;;  %s65_s17 = int_to_ptr.vmem [resolvable:$true] %s64_s17 }
  0x47   :  { %p6909_p5 = scmp.lt.u32.totalorder %s6905_s20, %s7344_s4 }
  0x49   :  { %p6911_p6 = pnand %p6909_p5, %p6906_p4 }
  0x4b   :  { %6914 = shalt.err (!%p6911_p6)
}
  0x4c   :  { %s6915_s26 = scalar_lea.vmem %s65_s17, 16  ;;  %s6919_s2 = scalar_lea.vmem %s65_s17, 32 }
  0x4d   :  { %p6916_p7 = scmp.ne.s32.totalorder %s65_s17, %s6915_s26  ;;  %p6920_p8 = scmp.lt.s32.totalorder %s65_s17, %s65_s17 }
  0x4e   :  { %p6921_p9 = scmp.lt.s32.totalorder %s6919_s2, %s6915_s26 }
  0x50   :  { %p6922_p10 = por %p6921_p9, %p6920_p8 }
  0x52   :  { %p6923_p11 = pnand %p6922_p10, %p6916_p7 }
  0x54   :  { %6926 = shalt.err (!%p6923_p11)
}
  0x55   :  { %67 = dma.hbm_to_vmem [thread:$0]  %s7344_s4, 16, %s65_s17, [#allocation9]  }
  0x56   :  { %6949 = dma.done.wait [#allocation3], 64  }
  0x57   :  { %6950 = vsyncadd [#allocation3], 4294967232 }
  0x58   :  { %6951 = dma.done.wait [#allocation6], 21120  }
  0x59   :  { %6952 = vsyncadd [#allocation6], 4294946176 }
  0x5a   :  { %6953 = dma.done.wait [#allocation9], 40976  }
  0x5b   :  { %6954 = vsyncadd [#allocation9], 4294926320  ;;  %v6966_v0 = vmov 0   ;;  %v85_v1 = vld [vmem:[#allocation5] sm:$0xff]  ;;  %v86_v3 = vld [vmem:[#allocation5 + $0x8] sm:$0xff]  ;;  %vm1255_vm0 = vcmask 523264  }
  0x5c   :  { %1291 = vmatprep.mubr.bf16.mxu0 %v6966_v0  ;;  %1332 = vmatprep.mubr.bf16.mxu1 %v6966_v0  ;;  %v105_v2 = vld [vmem:[#allocation5 + $0xa0] sm:$0xff]  ;;  %v106_v5 = vld [vmem:[#allocation5 + $0xa8] sm:$0xff]  ;;  %v87_v31 = vld [vmem:[#allocation5 + $0x10] sm:$0xff]  ;;  %s6967_s4 = smov [#allocation11]  }
  0x5d   :  { %v5545_v4 = vcombine.high %v85_v1, %v105_v2  ;;  %v5544_v6 = vcombine.low %v85_v1, %v105_v2  ;;  %v125_v7 = vld [vmem:[#allocation5 + $0x140] sm:$0xff]  ;;  %v5547_v9 = vcombine.high %v86_v3, %v106_v5  ;;  %v5546_v10 = vcombine.low %v86_v3, %v106_v5  ;;  %v126_v12 = vld [vmem:[#allocation5 + $0x148] sm:$0xff]  ;;  %v107_v32 = vld [vmem:[#allocation5 + $0xb0] sm:$0xff]  ;;  %s5533_s28 = sshll.u32 %s6967_s4, 4  ;;  %s5534_s28 = int_to_ptr.vmem [resolvable:$true] %s5533_s28 }
  0x5e   :  { %v145_v8 = vld [vmem:[#allocation5 + $0x1e0] sm:$0xff]  ;;  %v146_v13 = vld [vmem:[#allocation5 + $0x1e8] sm:$0xff]  ;;  %v88_v33 = vld [vmem:[#allocation5 + $0x18] sm:$0xff]  ;;  %v5549_v37 = vcombine.high %v87_v31, %v107_v32  ;;  %v5548_v44 = vcombine.low %v87_v31, %v107_v32  ;;  %s6927_s29 = scalar_lea.vmem %s5534_s28, 128  ;;  %p6932_p13 = scmp.lt.s32.totalorder %s5534_s28, %s5534_s28 }
  0x5f   :  { %v5585_v11 = vcombine.high %v125_v7, %v145_v8  ;;  %v165_v14 = vld [vmem:[#allocation5 + $0x280] sm:$0xff]  ;;  %1259 = vmatprep.subr.bf16.mxu0 %v5545_v4  ;;  %v5587_v15 = vcombine.high %v126_v12, %v146_v13  ;;  %v166_v17 = vld [vmem:[#allocation5 + $0x288] sm:$0xff]  ;;  %1300 = vmatprep.subr.bf16.mxu1 %v5547_v9  ;;  %v5584_v19 = vcombine.low %v125_v7, %v145_v8  ;;  %v108_v34 = vld [vmem:[#allocation5 + $0xb8] sm:$0xff]  ;;  %p6928_p12 = scmp.ne.s32.totalorder %s5534_s28, %s6927_s29  ;;  %p6933_p0 = scmp.lt.s32.totalorder %s6927_s29, %s6927_s29 }
  0x60   :  { %v185_v16 = vld [vmem:[#allocation5 + $0x320] sm:$0xff]  ;;  %v186_v18 = vld [vmem:[#allocation5 + $0x328] sm:$0xff]  ;;  %1260 = vmatpush1.bf16.msra.mxu0 %v5544_v6  ;;  %1301 = vmatpush1.bf16.msra.mxu1 %v5546_v10  ;;  %v5586_v20 = vcombine.low %v126_v12, %v146_v13  ;;  %v5551_v38 = vcombine.high %v88_v33, %v108_v34  ;;  %v127_v39 = vld [vmem:[#allocation5 + $0x150] sm:$0xff]  ;;  %v5550_v45 = vcombine.low %v88_v33, %v108_v34 }
  0x61   :  { %1261 = vmatprep.subr.bf16.mxu0 %v5585_v11  ;;  %v5625_v21 = vcombine.high %v165_v14, %v185_v16  ;;  %1302 = vmatprep.subr.bf16.mxu1 %v5587_v15  ;;  %v5627_v22 = vcombine.high %v166_v17, %v186_v18  ;;  %v205_v23 = vld [vmem:[#allocation5 + $0x3c0] sm:$0xff]  ;;  %v206_v25 = vld [vmem:[#allocation5 + $0x3c8] sm:$0xff]  ;;  %v5624_v27 = vcombine.low %v165_v14, %v185_v16  ;;  %v147_v40 = vld [vmem:[#allocation5 + $0x1f0] sm:$0xff]  ;;  %p6934_p1 = por %p6933_p0, %p6932_p13 }
  0x62   :  { %v225_v24 = vld [vmem:[#allocation5 + $0x460] sm:$0xff]  ;;  %v226_v26 = vld [vmem:[#allocation5 + $0x468] sm:$0xff]  ;;  %v5626_v28 = vcombine.low %v166_v17, %v186_v18  ;;  %v128_v41 = vld [vmem:[#allocation5 + $0x158] sm:$0xff]  ;;  %v5589_v46 = vcombine.high %v127_v39, %v147_v40  ;;  %v5588_v52 = vcombine.low %v127_v39, %v147_v40 }
  0x63   :  { %v5665_v29 = vcombine.high %v205_v23, %v225_v24  ;;  %v5667_v30 = vcombine.high %v206_v25, %v226_v26  ;;  %v5664_v35 = vcombine.low %v205_v23, %v225_v24  ;;  %v5666_v36 = vcombine.low %v206_v25, %v226_v26  ;;  %v148_v42 = vld [vmem:[#allocation5 + $0x1f8] sm:$0xff]  ;;  %v167_v48 = vld [vmem:[#allocation5 + $0x290] sm:$0xff]  ;;  %v89_v1 = vld [vmem:[#allocation5 + $0x20] sm:$0xff]  ;;  %p6935_p2 = pnand %p6934_p1, %p6928_p12 }
  0x64   :  { %1262 = vmatpush1.bf16.msra.mxu0 %v5584_v19  ;;  %1303 = vmatpush1.bf16.msra.mxu1 %v5586_v20  ;;  %v7060_v43 = vld [vmem:[#allocation2] sm:$0xf]  ;;  %v5591_v47 = vcombine.high %v128_v41, %v148_v42  ;;  %v187_v49 = vld [vmem:[#allocation5 + $0x330] sm:$0xff]  ;;  %v5590_v53 = vcombine.low %v128_v41, %v148_v42  ;;  %v109_v2 = vld [vmem:[#allocation5 + $0xc0] sm:$0xff] }
  0x65   :  { %1263 = vmatprep.subr.bf16.mxu0 %v5625_v21  ;;  %1304 = vmatprep.subr.bf16.mxu1 %v5627_v22  ;;  %v168_v50 = vld [vmem:[#allocation5 + $0x298] sm:$0xff]  ;;  %v5629_v54 = vcombine.high %v167_v48, %v187_v49  ;;  %v207_v56 = vld [vmem:[#allocation5 + $0x3d0] sm:$0xff]  ;;  %v5628_v60 = vcombine.low %v167_v48, %v187_v49  ;;  %v90_v3 = vld [vmem:[#allocation5 + $0x28] sm:$0xff]  ;;  %v5553_v7 = vcombine.high %v89_v1, %v109_v2 }
  0x66   :  { %v188_v51 = vld [vmem:[#allocation5 + $0x338] sm:$0xff]  ;;  %v227_v57 = vld [vmem:[#allocation5 + $0x470] sm:$0xff]  ;;  %v110_v4 = vld [vmem:[#allocation5 + $0xc8] sm:$0xff]  ;;  %v5552_v13 = vcombine.low %v89_v1, %v109_v2 }
  0x67   :  { %v5631_v55 = vcombine.high %v168_v50, %v188_v51  ;;  %v208_v58 = vld [vmem:[#allocation5 + $0x3d8] sm:$0xff]  ;;  %v5630_v61 = vcombine.low %v168_v50, %v188_v51  ;;  %v5669_v62 = vcombine.high %v207_v56, %v227_v57  ;;  %v5668_v5 = vcombine.low %v207_v56, %v227_v57  ;;  %v129_v9 = vld [vmem:[#allocation5 + $0x160] sm:$0xff]  ;;  %v130_v11 = vld [vmem:[#allocation5 + $0x168] sm:$0xff] }
  0x68   :  { %1264 = vmatpush1.bf16.msra.mxu0 %v5624_v27  ;;  %1305 = vmatpush1.bf16.msra.mxu1 %v5626_v28  ;;  %v228_v59 = vld [vmem:[#allocation5 + $0x478] sm:$0xff]  ;;  %v5555_v8 = vcombine.high %v90_v3, %v110_v4  ;;  %v149_v10 = vld [vmem:[#allocation5 + $0x200] sm:$0xff]  ;;  %v150_v12 = vld [vmem:[#allocation5 + $0x208] sm:$0xff]  ;;  %v5554_v14 = vcombine.low %v90_v3, %v110_v4 }
  0x69   :  { %1265 = vmatprep.subr.bf16.mxu0 %v5665_v29  ;;  %1306 = vmatprep.subr.bf16.mxu1 %v5667_v30  ;;  %v5671_v63 = vcombine.high %v208_v58, %v228_v59  ;;  %v5670_v6 = vcombine.low %v208_v58, %v228_v59  ;;  %v5593_v15 = vcombine.high %v129_v9, %v149_v10  ;;  %v169_v17 = vld [vmem:[#allocation5 + $0x2a0] sm:$0xff]  ;;  %v170_v19 = vld [vmem:[#allocation5 + $0x2a8] sm:$0xff]  ;;  %v91_v33 = vld [vmem:[#allocation5 + $0x30] sm:$0xff] }
  0x6a   :  { %v5595_v16 = vcombine.high %v130_v11, %v150_v12  ;;  %v189_v18 = vld [vmem:[#allocation5 + $0x340] sm:$0xff]  ;;  %v190_v20 = vld [vmem:[#allocation5 + $0x348] sm:$0xff]  ;;  %v5592_v21 = vcombine.low %v129_v9, %v149_v10  ;;  %v5594_v22 = vcombine.low %v130_v11, %v150_v12  ;;  %v111_v34 = vld [vmem:[#allocation5 + $0xd0] sm:$0xff] }
  0x6b   :  { %v5633_v23 = vcombine.high %v169_v17, %v189_v18  ;;  %v5635_v24 = vcombine.high %v170_v19, %v190_v20  ;;  %v209_v25 = vld [vmem:[#allocation5 + $0x3e0] sm:$0xff]  ;;  %v210_v27 = vld [vmem:[#allocation5 + $0x3e8] sm:$0xff]  ;;  %v5632_v29 = vcombine.low %v169_v17, %v189_v18  ;;  %v5634_v30 = vcombine.low %v170_v19, %v190_v20  ;;  %v131_v41 = vld [vmem:[#allocation5 + $0x170] sm:$0xff] }
  0x6c   :  { %1266 = vmatpush1.bf16.msra.mxu0 %v5664_v35  ;;  %1307 = vmatpush1.bf16.msra.mxu1 %v5666_v36  ;;  %v229_v26 = vld [vmem:[#allocation5 + $0x480] sm:$0xff]  ;;  %v230_v28 = vld [vmem:[#allocation5 + $0x488] sm:$0xff]  ;;  %v92_v35 = vld [vmem:[#allocation5 + $0x38] sm:$0xff]  ;;  %v5557_v39 = vcombine.high %v91_v33, %v111_v34 }
  0x6d   :  { %1341 = vmatprep.subr.bf16.mxu0 %v5549_v37  ;;  %1382 = vmatprep.subr.bf16.mxu1 %v5551_v38  ;;  %v5673_v31 = vcombine.high %v209_v25, %v229_v26  ;;  %v5675_v32 = vcombine.high %v210_v27, %v230_v28  ;;  %v112_v36 = vld [vmem:[#allocation5 + $0xd8] sm:$0xff]  ;;  %v5672_v37 = vcombine.low %v209_v25, %v229_v26  ;;  %v151_v42 = vld [vmem:[#allocation5 + $0x210] sm:$0xff]  ;;  %v113_v3 = vld [vmem:[#allocation5 + $0xe0] sm:$0xff] }
  0x6e   :  { %v5674_v38 = vcombine.low %v210_v27, %v230_v28  ;;  %v5559_v40 = vcombine.high %v92_v35, %v112_v36  ;;  %v5597_v48 = vcombine.high %v131_v41, %v151_v42  ;;  %v171_v50 = vld [vmem:[#allocation5 + $0x2b0] sm:$0xff]  ;;  %v153_v11 = vld [vmem:[#allocation5 + $0x220] sm:$0xff] }
  0x6f   :  { %5704 = vmatmul.mubr.msk.bf16.vlgmr.msra.gmra.mrb[0].mxu0 %vm1255_vm0, %v7060_v43  ;;  %5705 = vmatmul.mubr.msk.bf16.vlgmr.msra.gmra.mrb[0].mxu1 %vm1255_vm0, %v7060_v43  ;;  %v191_v51 = vld [vmem:[#allocation5 + $0x350] sm:$0xff]  ;;  %v193_v19 = vld [vmem:[#allocation5 + $0x360] sm:$0xff] }
  0x70   :  { %1342 = vmatpush1.bf16.msra.mxu0 %v5548_v44  ;;  %1383 = vmatpush1.bf16.msra.mxu1 %v5550_v45  ;;  %v132_v44 = vld [vmem:[#allocation5 + $0x178] sm:$0xff]  ;;  %v5637_v56 = vcombine.high %v171_v50, %v191_v51  ;;  %v211_v57 = vld [vmem:[#allocation5 + $0x3f0] sm:$0xff]  ;;  %v233_v27 = vld [vmem:[#allocation5 + $0x4a0] sm:$0xff] }
  0x71   :  { %1343 = vmatprep.subr.bf16.mxu0 %v5589_v46  ;;  %1384 = vmatprep.subr.bf16.mxu1 %v5591_v47  ;;  %v152_v45 = vld [vmem:[#allocation5 + $0x218] sm:$0xff]  ;;  %v5556_v46 = vcombine.low %v91_v33, %v111_v34  ;;  %v5558_v47 = vcombine.low %v92_v35, %v112_v36  ;;  %v231_v58 = vld [vmem:[#allocation5 + $0x490] sm:$0xff] }
  0x72   :  { %1373 = vmatprep.mubr.bf16.mxu0 %v6966_v0  ;;  %1414 = vmatprep.mubr.bf16.mxu1 %v6966_v0  ;;  %v5599_v49 = vcombine.high %v132_v44, %v152_v45  ;;  %v5677_v2 = vcombine.high %v211_v57, %v231_v58  ;;  %v115_v35 = vld [vmem:[#allocation5 + $0xf0] sm:$0xff] }
  0x74   :  { %1344 = vmatpush1.bf16.msra.mxu0 %v5588_v52  ;;  %1385 = vmatpush1.bf16.msra.mxu1 %v5590_v53  ;;  %v172_v52 = vld [vmem:[#allocation5 + $0x2b8] sm:$0xff] }
  0x75   :  { %1345 = vmatprep.subr.bf16.mxu0 %v5629_v54  ;;  %1386 = vmatprep.subr.bf16.mxu1 %v5631_v55  ;;  %v192_v53 = vld [vmem:[#allocation5 + $0x358] sm:$0xff]  ;;  %v5596_v54 = vcombine.low %v131_v41, %v151_v42  ;;  %v5598_v55 = vcombine.low %v132_v44, %v152_v45  ;;  %v155_v41 = vld [vmem:[#allocation5 + $0x230] sm:$0xff] }
  0x76   :  { %v5639_v59 = vcombine.high %v172_v52, %v192_v53  ;;  %v5638_v1 = vcombine.low %v172_v52, %v192_v53  ;;  %v136_v45 = vld [vmem:[#allocation5 + $0x198] sm:$0xff] }
  0x77   :  { %v176_v53 = vld [vmem:[#allocation5 + $0x2d8] sm:$0xff] }
  0x78   :  { %1346 = vmatpush1.bf16.msra.mxu0 %v5628_v60  ;;  %1387 = vmatpush1.bf16.msra.mxu1 %v5630_v61  ;;  %v212_v60 = vld [vmem:[#allocation5 + $0x3f8] sm:$0xff] }
  0x79   :  { %1347 = vmatprep.subr.bf16.mxu0 %v5669_v62  ;;  %1388 = vmatprep.subr.bf16.mxu1 %v5671_v63  ;;  %v232_v61 = vld [vmem:[#allocation5 + $0x498] sm:$0xff]  ;;  %v5636_v62 = vcombine.low %v171_v50, %v191_v51  ;;  %v93_v63 = vld [vmem:[#allocation5 + $0x40] sm:$0xff]  ;;  %v195_v50 = vld [vmem:[#allocation5 + $0x370] sm:$0xff] }
  0x7a   :  { %v5679_v4 = vcombine.high %v212_v60, %v232_v61  ;;  %v5678_v9 = vcombine.low %v212_v60, %v232_v61  ;;  %v5561_v10 = vcombine.high %v93_v63, %v113_v3  ;;  %v216_v61 = vld [vmem:[#allocation5 + $0x418] sm:$0xff] }
  0x7c   :  { %1348 = vmatpush1.bf16.msra.mxu0 %v5668_v5  ;;  %1389 = vmatpush1.bf16.msra.mxu1 %v5670_v6  ;;  %v94_v5 = vld [vmem:[#allocation5 + $0x48] sm:$0xff] }
  0x7d   :  { %1423 = vmatprep.subr.bf16.mxu0 %v5553_v7  ;;  %1464 = vmatprep.subr.bf16.mxu1 %v5555_v8  ;;  %v114_v6 = vld [vmem:[#allocation5 + $0xe8] sm:$0xff]  ;;  %v5676_v7 = vcombine.low %v211_v57, %v231_v58  ;;  %v133_v8 = vld [vmem:[#allocation5 + $0x180] sm:$0xff]  ;;  %v215_v57 = vld [vmem:[#allocation5 + $0x410] sm:$0xff] }
  0x7e   :  { %v5563_v12 = vcombine.high %v94_v5, %v114_v6  ;;  %v5562_v17 = vcombine.low %v94_v5, %v114_v6  ;;  %v5601_v18 = vcombine.high %v133_v8, %v153_v11  ;;  %v235_v58 = vld [vmem:[#allocation5 + $0x4b0] sm:$0xff]  ;;  %v98_v6 = vld [vmem:[#allocation5 + $0x68] sm:$0xff] }
  0x7f   :  { %5706 = vmatmul.mubr.msk.bf16.vlgmr.msra.gmra.mrb[4].mxu0 %vm1255_vm0, %v7060_v43  ;;  %5707 = vmatmul.mubr.msk.bf16.vlgmr.msra.gmra.mrb[4].mxu1 %vm1255_vm0, %v7060_v43  ;;  %v5685_v5 = vcombine.high %v215_v57, %v235_v58 }
  0x80   :  { %1424 = vmatpush1.bf16.msra.mxu0 %v5552_v13  ;;  %1465 = vmatpush1.bf16.msra.mxu1 %v5554_v14  ;;  %v134_v13 = vld [vmem:[#allocation5 + $0x188] sm:$0xff] }
  0x81   :  { %1425 = vmatprep.subr.bf16.mxu0 %v5593_v15  ;;  %1466 = vmatprep.subr.bf16.mxu1 %v5595_v16  ;;  %v154_v14 = vld [vmem:[#allocation5 + $0x228] sm:$0xff]  ;;  %v5560_v15 = vcombine.low %v93_v63, %v113_v3  ;;  %v173_v16 = vld [vmem:[#allocation5 + $0x2c0] sm:$0xff] }
  0x82   :  { %1455 = vmatprep.mubr.bf16.mxu0 %v6966_v0  ;;  %1496 = vmatprep.mubr.bf16.mxu1 %v6966_v0  ;;  %v5603_v20 = vcombine.high %v134_v13, %v154_v14  ;;  %v5602_v25 = vcombine.low %v134_v13, %v154_v14  ;;  %v5641_v26 = vcombine.high %v173_v16, %v193_v19  ;;  %v117_v3 = vld [vmem:[#allocation5 + $0x100] sm:$0xff]  ;;  %v138_v14 = vld [vmem:[#allocation5 + $0x1a8] sm:$0xff] }
  0x84   :  { %1426 = vmatpush1.bf16.msra.mxu0 %v5592_v21  ;;  %1467 = vmatpush1.bf16.msra.mxu1 %v5594_v22  ;;  %v174_v21 = vld [vmem:[#allocation5 + $0x2c8] sm:$0xff] }
  0x85   :  { %1427 = vmatprep.subr.bf16.mxu0 %v5633_v23  ;;  %1468 = vmatprep.subr.bf16.mxu1 %v5635_v24  ;;  %v194_v22 = vld [vmem:[#allocation5 + $0x368] sm:$0xff]  ;;  %v5600_v23 = vcombine.low %v133_v8, %v153_v11  ;;  %v213_v24 = vld [vmem:[#allocation5 + $0x400] sm:$0xff] }
  0x86   :  { %v5643_v28 = vcombine.high %v174_v21, %v194_v22  ;;  %v5642_v33 = vcombine.low %v174_v21, %v194_v22  ;;  %v5681_v34 = vcombine.high %v213_v24, %v233_v27  ;;  %v157_v11 = vld [vmem:[#allocation5 + $0x240] sm:$0xff]  ;;  %v178_v22 = vld [vmem:[#allocation5 + $0x2e8] sm:$0xff] }
  0x88   :  { %1428 = vmatpush1.bf16.msra.mxu0 %v5632_v29  ;;  %1469 = vmatpush1.bf16.msra.mxu1 %v5634_v30  ;;  %v214_v29 = vld [vmem:[#allocation5 + $0x408] sm:$0xff] }
  0x89   :  { %1429 = vmatprep.subr.bf16.mxu0 %v5673_v31  ;;  %1470 = vmatprep.subr.bf16.mxu1 %v5675_v32  ;;  %v234_v30 = vld [vmem:[#allocation5 + $0x4a8] sm:$0xff]  ;;  %v5640_v31 = vcombine.low %v173_v16, %v193_v19  ;;  %v95_v32 = vld [vmem:[#allocation5 + $0x50] sm:$0xff]  ;;  %v197_v19 = vld [vmem:[#allocation5 + $0x380] sm:$0xff] }
  0x8a   :  { %v5683_v36 = vcombine.high %v214_v29, %v234_v30  ;;  %v5682_v42 = vcombine.low %v214_v29, %v234_v30  ;;  %v5565_v44 = vcombine.high %v95_v32, %v115_v35  ;;  %v237_v29 = vld [vmem:[#allocation5 + $0x4c0] sm:$0xff] }
  0x8c   :  { %1430 = vmatpush1.bf16.msra.mxu0 %v5672_v37  ;;  %1471 = vmatpush1.bf16.msra.mxu1 %v5674_v38  ;;  %v96_v37 = vld [vmem:[#allocation5 + $0x58] sm:$0xff] }
  0x8d   :  { %1505 = vmatprep.subr.bf16.mxu0 %v5557_v39  ;;  %1546 = vmatprep.subr.bf16.mxu1 %v5559_v40  ;;  %v116_v38 = vld [vmem:[#allocation5 + $0xf8] sm:$0xff]  ;;  %v5680_v39 = vcombine.low %v213_v24, %v233_v27  ;;  %v135_v40 = vld [vmem:[#allocation5 + $0x190] sm:$0xff] }
  0x8e   :  { %v5566_v51 = vcombine.low %v96_v37, %v116_v38  ;;  %v5605_v52 = vcombine.high %v135_v40, %v155_v41 }
  0x8f   :  { %5708 = vmatmul.mubr.msk.bf16.vlgmr.msra.gmra.mrb[8].mxu0 %vm1255_vm0, %v7060_v43  ;;  %5709 = vmatmul.mubr.msk.bf16.vlgmr.msra.gmra.mrb[8].mxu1 %vm1255_vm0, %v7060_v43 }
  0x90   :  { %1506 = vmatpush1.bf16.msra.mxu0 %v5556_v46  ;;  %1547 = vmatpush1.bf16.msra.mxu1 %v5558_v47  ;;  %v156_v46 = vld [vmem:[#allocation5 + $0x238] sm:$0xff]  ;;  %v5567_v47 = vcombine.high %v96_v37, %v116_v38  ;;  %v119_v37 = vld [vmem:[#allocation5 + $0x110] sm:$0xff] }
  0x91   :  { %1507 = vmatprep.subr.bf16.mxu0 %v5597_v48  ;;  %1548 = vmatprep.subr.bf16.mxu1 %v5599_v49  ;;  %v5564_v48 = vcombine.low %v95_v32, %v115_v35  ;;  %v175_v49 = vld [vmem:[#allocation5 + $0x2d0] sm:$0xff]  ;;  %v238_v32 = vld [vmem:[#allocation5 + $0x4c8] sm:$0xff] }
  0x92   :  { %1537 = vmatprep.mubr.bf16.mxu0 %v6966_v0  ;;  %1578 = vmatprep.mubr.bf16.mxu1 %v6966_v0  ;;  %v5645_v60 = vcombine.high %v175_v49, %v195_v50 }
  0x94   :  { %1508 = vmatpush1.bf16.msra.mxu0 %v5596_v54  ;;  %1549 = vmatpush1.bf16.msra.mxu1 %v5598_v55  ;;  %v196_v54 = vld [vmem:[#allocation5 + $0x378] sm:$0xff]  ;;  %v5607_v55 = vcombine.high %v136_v45, %v156_v46 }
  0x95   :  { %1509 = vmatprep.subr.bf16.mxu0 %v5637_v56  ;;  %1550 = vmatprep.subr.bf16.mxu1 %v5639_v59  ;;  %v5604_v56 = vcombine.low %v135_v40, %v155_v41  ;;  %v5606_v59 = vcombine.low %v136_v45, %v156_v46  ;;  %v5647_v63 = vcombine.high %v176_v53, %v196_v54  ;;  %v120_v40 = vld [vmem:[#allocation5 + $0x118] sm:$0xff]  ;;  %v139_v45 = vld [vmem:[#allocation5 + $0x1b0] sm:$0xff] }
  0x96   :  { %v159_v46 = vld [vmem:[#allocation5 + $0x250] sm:$0xff] }
  0x98   :  { %1510 = vmatpush1.bf16.msra.mxu0 %v5636_v62  ;;  %1551 = vmatpush1.bf16.msra.mxu1 %v5638_v1  ;;  %v236_v62 = vld [vmem:[#allocation5 + $0x4b8] sm:$0xff]  ;;  %v5644_v1 = vcombine.low %v175_v49, %v195_v50 }
  0x99   :  { %1511 = vmatprep.subr.bf16.mxu0 %v5677_v2  ;;  %1552 = vmatprep.subr.bf16.mxu1 %v5679_v4  ;;  %v97_v2 = vld [vmem:[#allocation5 + $0x60] sm:$0xff]  ;;  %v5646_v4 = vcombine.low %v176_v53, %v196_v54  ;;  %v5687_v8 = vcombine.high %v216_v61, %v236_v62  ;;  %v160_v49 = vld [vmem:[#allocation5 + $0x258] sm:$0xff]  ;;  %v179_v53 = vld [vmem:[#allocation5 + $0x2f0] sm:$0xff] }
  0x9a   :  { %v5569_v13 = vcombine.high %v97_v2, %v117_v3  ;;  %v199_v54 = vld [vmem:[#allocation5 + $0x390] sm:$0xff] }
  0x9c   :  { %1512 = vmatpush1.bf16.msra.mxu0 %v5676_v7  ;;  %1553 = vmatpush1.bf16.msra.mxu1 %v5678_v9  ;;  %v118_v7 = vld [vmem:[#allocation5 + $0x108] sm:$0xff]  ;;  %v5684_v9 = vcombine.low %v215_v57, %v235_v58  ;;  %v200_v57 = vld [vmem:[#allocation5 + $0x398] sm:$0xff]  ;;  %v5612_v58 = vcombine.low %v139_v45, %v159_v46 }
  0x9d   :  { %1587 = vmatprep.subr.bf16.mxu0 %v5561_v10  ;;  %1628 = vmatprep.subr.bf16.mxu1 %v5563_v12  ;;  %v137_v10 = vld [vmem:[#allocation5 + $0x1a0] sm:$0xff]  ;;  %v5686_v12 = vcombine.low %v216_v61, %v236_v62  ;;  %v5571_v16 = vcombine.high %v98_v6, %v118_v7  ;;  %v219_v61 = vld [vmem:[#allocation5 + $0x430] sm:$0xff] }
  0x9e   :  { %v5609_v21 = vcombine.high %v137_v10, %v157_v11  ;;  %v239_v62 = vld [vmem:[#allocation5 + $0x4d0] sm:$0xff] }
  0x9f   :  { %5710 = vmatmul.mubr.msk.bf16.vlgmr.msra.gmra.mrb[12].mxu0 %vm1255_vm0, %v7060_v43  ;;  %5711 = vmatmul.mubr.msk.bf16.vlgmr.msra.gmra.mrb[12].mxu1 %vm1255_vm0, %v7060_v43 }
  0xa0   :  { %1588 = vmatpush1.bf16.msra.mxu0 %v5560_v15  ;;  %1629 = vmatpush1.bf16.msra.mxu1 %v5562_v17  ;;  %v158_v15 = vld [vmem:[#allocation5 + $0x248] sm:$0xff]  ;;  %v5568_v17 = vcombine.low %v97_v2, %v117_v3  ;;  %v240_v2 = vld [vmem:[#allocation5 + $0x4d8] sm:$0xff]  ;;  %v5652_v3 = vcombine.low %v179_v53, %v199_v54 }
  0xa1   :  { %1589 = vmatprep.subr.bf16.mxu0 %v5601_v18  ;;  %1630 = vmatprep.subr.bf16.mxu1 %v5603_v20  ;;  %v177_v18 = vld [vmem:[#allocation5 + $0x2e0] sm:$0xff]  ;;  %v5570_v20 = vcombine.low %v98_v6, %v118_v7  ;;  %v5611_v24 = vcombine.high %v138_v14, %v158_v15 }
  0xa2   :  { %1619 = vmatprep.mubr.bf16.mxu0 %v6966_v0  ;;  %1660 = vmatprep.mubr.bf16.mxu1 %v6966_v0  ;;  %v5649_v27 = vcombine.high %v177_v18, %v197_v19  ;;  %v121_v6 = vld [vmem:[#allocation5 + $0x120] sm:$0xff] }
  0xa4   :  { %1590 = vmatpush1.bf16.msra.mxu0 %v5600_v23  ;;  %1631 = vmatpush1.bf16.msra.mxu1 %v5602_v25  ;;  %v198_v23 = vld [vmem:[#allocation5 + $0x388] sm:$0xff]  ;;  %v5608_v25 = vcombine.low %v137_v10, %v157_v11  ;;  %v5692_v10 = vcombine.low %v219_v61, %v239_v62 }
  0xa5   :  { %1591 = vmatprep.subr.bf16.mxu0 %v5641_v26  ;;  %1632 = vmatprep.subr.bf16.mxu1 %v5643_v28  ;;  %v5610_v26 = vcombine.low %v138_v14, %v158_v15  ;;  %v217_v28 = vld [vmem:[#allocation5 + $0x420] sm:$0xff]  ;;  %v5651_v30 = vcombine.high %v178_v22, %v198_v23 }
  0xa6   :  { %v5689_v35 = vcombine.high %v217_v28, %v237_v29  ;;  %v5688_v41 = vcombine.low %v217_v28, %v237_v29  ;;  %v161_v14 = vld [vmem:[#allocation5 + $0x260] sm:$0xff] }
  0xa8   :  { %1592 = vmatpush1.bf16.msra.mxu0 %v5640_v31  ;;  %1633 = vmatpush1.bf16.msra.mxu1 %v5642_v33  ;;  %v218_v31 = vld [vmem:[#allocation5 + $0x428] sm:$0xff]  ;;  %v5648_v33 = vcombine.low %v177_v18, %v197_v19 }
  0xa9   :  { %1593 = vmatprep.subr.bf16.mxu0 %v5681_v34  ;;  %1634 = vmatprep.subr.bf16.mxu1 %v5683_v36  ;;  %v5650_v34 = vcombine.low %v178_v22, %v198_v23  ;;  %v99_v36 = vld [vmem:[#allocation5 + $0x70] sm:$0xff]  ;;  %v5691_v38 = vcombine.high %v218_v31, %v238_v32  ;;  %v201_v22 = vld [vmem:[#allocation5 + $0x3a0] sm:$0xff] }
  0xaa   :  { %v5572_v50 = vcombine.low %v99_v36, %v119_v37 }
  0xac   :  { %1594 = vmatpush1.bf16.msra.mxu0 %v5680_v39  ;;  %1635 = vmatpush1.bf16.msra.mxu1 %v5682_v42  ;;  %v100_v39 = vld [vmem:[#allocation5 + $0x78] sm:$0xff]  ;;  %v5690_v42 = vcombine.low %v218_v31, %v238_v32  ;;  %v241_v31 = vld [vmem:[#allocation5 + $0x4e0] sm:$0xff] }
  0xad   :  { %1669 = vmatprep.subr.bf16.mxu0 %v5565_v44  ;;  %1710 = vmatprep.subr.bf16.mxu1 %v5567_v47  ;;  %v5573_v44 = vcombine.high %v99_v36, %v119_v37  ;;  %v5575_v47 = vcombine.high %v100_v39, %v120_v40 }
  0xaf   :  { %5712 = vmatmul.mubr.msk.bf16.vlgmr.msra.gmra.mrb[16].mxu0 %vm1255_vm0, %v7060_v43  ;;  %5713 = vmatmul.mubr.msk.bf16.vlgmr.msra.gmra.mrb[16].mxu1 %vm1255_vm0, %v7060_v43 }
  0xb0   :  { %1670 = vmatpush1.bf16.msra.mxu0 %v5564_v48  ;;  %1711 = vmatpush1.bf16.msra.mxu1 %v5566_v51  ;;  %v140_v48 = vld [vmem:[#allocation5 + $0x1b8] sm:$0xff]  ;;  %v5574_v51 = vcombine.low %v100_v39, %v120_v40  ;;  %v123_v39 = vld [vmem:[#allocation5 + $0x130] sm:$0xff] }
  0xb1   :  { %1671 = vmatprep.subr.bf16.mxu0 %v5605_v52  ;;  %1712 = vmatprep.subr.bf16.mxu1 %v5607_v55  ;;  %v5613_v52 = vcombine.high %v139_v45, %v159_v46  ;;  %v5615_v55 = vcombine.high %v140_v48, %v160_v49 }
  0xb2   :  { %1701 = vmatprep.mubr.bf16.mxu0 %v6966_v0  ;;  %1742 = vmatprep.mubr.bf16.mxu1 %v6966_v0 }
  0xb4   :  { %1672 = vmatpush1.bf16.msra.mxu0 %v5604_v56  ;;  %1713 = vmatpush1.bf16.msra.mxu1 %v5606_v59  ;;  %v180_v56 = vld [vmem:[#allocation5 + $0x2f8] sm:$0xff]  ;;  %v5614_v59 = vcombine.low %v140_v48, %v160_v49  ;;  %v143_v48 = vld [vmem:[#allocation5 + $0x1d0] sm:$0xff] }
  0xb5   :  { %1673 = vmatprep.subr.bf16.mxu0 %v5645_v60  ;;  %1714 = vmatprep.subr.bf16.mxu1 %v5647_v63  ;;  %v5653_v60 = vcombine.high %v179_v53, %v199_v54  ;;  %v5655_v63 = vcombine.high %v180_v56, %v200_v57  ;;  %v163_v49 = vld [vmem:[#allocation5 + $0x270] sm:$0xff] }
  0xb6   :  { %v5621_v54 = vcombine.high %v143_v48, %v163_v49 }
  0xb8   :  { %1674 = vmatpush1.bf16.msra.mxu0 %v5644_v1  ;;  %1715 = vmatpush1.bf16.msra.mxu1 %v5646_v4  ;;  %v220_v1 = vld [vmem:[#allocation5 + $0x438] sm:$0xff]  ;;  %v5693_v4 = vcombine.high %v219_v61, %v239_v62 }
  0xb9   :  { %1675 = vmatprep.subr.bf16.mxu0 %v5685_v5  ;;  %1716 = vmatprep.subr.bf16.mxu1 %v5687_v8  ;;  %v101_v5 = vld [vmem:[#allocation5 + $0x80] sm:$0xff]  ;;  %v5695_v7 = vcombine.high %v220_v1, %v240_v2  ;;  %v102_v8 = vld [vmem:[#allocation5 + $0x88] sm:$0xff]  ;;  %v5694_v11 = vcombine.low %v220_v1, %v240_v2  ;;  %v243_v1 = vld [vmem:[#allocation5 + $0x4f0] sm:$0xff] }
  0xba   :  { %v5576_v18 = vcombine.low %v101_v5, %v121_v6 }
  0xbc   :  { %1676 = vmatpush1.bf16.msra.mxu0 %v5684_v9  ;;  %1717 = vmatpush1.bf16.msra.mxu1 %v5686_v12  ;;  %v122_v9 = vld [vmem:[#allocation5 + $0x128] sm:$0xff]  ;;  %v5577_v12 = vcombine.high %v101_v5, %v121_v6 }
  0xbd   :  { %1751 = vmatprep.subr.bf16.mxu0 %v5569_v13  ;;  %1792 = vmatprep.subr.bf16.mxu1 %v5571_v16  ;;  %v141_v13 = vld [vmem:[#allocation5 + $0x1c0] sm:$0xff]  ;;  %v5579_v15 = vcombine.high %v102_v8, %v122_v9  ;;  %v142_v16 = vld [vmem:[#allocation5 + $0x1c8] sm:$0xff]  ;;  %v5578_v19 = vcombine.low %v102_v8, %v122_v9 }
  0xbf   :  { %5714 = vmatmul.mubr.msk.bf16.vlgmr.msra.gmra.mrb[20].mxu0 %vm1255_vm0, %v7060_v43  ;;  %5715 = vmatmul.mubr.msk.bf16.vlgmr.msra.gmra.mrb[20].mxu1 %vm1255_vm0, %v7060_v43 }
  0xc0   :  { %1752 = vmatpush1.bf16.msra.mxu0 %v5568_v17  ;;  %1793 = vmatpush1.bf16.msra.mxu1 %v5570_v20  ;;  %v162_v17 = vld [vmem:[#allocation5 + $0x268] sm:$0xff]  ;;  %v5617_v20 = vcombine.high %v141_v13, %v161_v14 }
  0xc1   :  { %1753 = vmatprep.subr.bf16.mxu0 %v5609_v21  ;;  %1794 = vmatprep.subr.bf16.mxu1 %v5611_v24  ;;  %v181_v21 = vld [vmem:[#allocation5 + $0x300] sm:$0xff]  ;;  %v5619_v23 = vcombine.high %v142_v16, %v162_v17  ;;  %v182_v24 = vld [vmem:[#allocation5 + $0x308] sm:$0xff]  ;;  %v5618_v28 = vcombine.low %v142_v16, %v162_v17  ;;  %v6503_v16 = vld [vmem:[#allocation8 + $0x88] sm:$0xff]  }
  0xc2   :  { %1783 = vmatprep.mubr.bf16.mxu0 %v6966_v0  ;;  %1824 = vmatprep.mubr.bf16.mxu1 %v6966_v0  ;;  %v5657_v29 = vcombine.high %v181_v21, %v201_v22  ;;  %v6504_v17 = vld [vmem:[#allocation8 + $0x50] sm:$0xff]  }
  0xc4   :  { %1754 = vmatpush1.bf16.msra.mxu0 %v5608_v25  ;;  %1795 = vmatpush1.bf16.msra.mxu1 %v5610_v26  ;;  %v7104_v25 = vld [vmem:[#allocation2] sm:$0xf]  ;;  %v202_v26 = vld [vmem:[#allocation5 + $0x3a8] sm:$0xff] }
  0xc5   :  { %1755 = vmatprep.subr.bf16.mxu0 %v5649_v27  ;;  %1796 = vmatprep.subr.bf16.mxu1 %v5651_v30  ;;  %v5616_v27 = vcombine.low %v141_v13, %v161_v14  ;;  %v221_v30 = vld [vmem:[#allocation5 + $0x440] sm:$0xff]  ;;  %v5659_v32 = vcombine.high %v182_v24, %v202_v26  ;;  %v5658_v36 = vcombine.low %v182_v24, %v202_v26  ;;  %v6500_v13 = vld [vmem:[#allocation8 + $0x48] sm:$0xff]   ;;  %v6512_v26 = vld [vmem:[#allocation8 + $0x60] sm:$0xff]  }
  0xc6   :  { %v5697_v37 = vcombine.high %v221_v30, %v241_v31  ;;  %v6501_v14 = vld [vmem:[#allocation8 + $0xc8] sm:$0xff]   ;;  %v6511_v24 = vld [vmem:[#allocation8 + $0x98] sm:$0xff]  }
  0xc8   :  { %1756 = vmatpush1.bf16.msra.mxu0 %v5648_v33  ;;  %1797 = vmatpush1.bf16.msra.mxu1 %v5650_v34  ;;  %v222_v33 = vld [vmem:[#allocation5 + $0x448] sm:$0xff] }
  0xc9   :  { %1757 = vmatprep.subr.bf16.mxu0 %v5689_v35  ;;  %1798 = vmatprep.subr.bf16.mxu1 %v5691_v38  ;;  %v242_v34 = vld [vmem:[#allocation5 + $0x4e8] sm:$0xff]  ;;  %v5656_v35 = vcombine.low %v181_v21, %v201_v22  ;;  %v103_v38 = vld [vmem:[#allocation5 + $0x90] sm:$0xff]  ;;  %v6508_v21 = vld [vmem:[#allocation8 + $0x58] sm:$0xff]  }
  0xca   :  { %v5699_v40 = vcombine.high %v222_v33, %v242_v34  ;;  %v5698_v45 = vcombine.low %v222_v33, %v242_v34  ;;  %v5581_v46 = vcombine.high %v103_v38, %v123_v39  ;;  %v6509_v22 = vld [vmem:[#allocation8 + $0xd8] sm:$0xff]   ;;  %v6520_v33 = vld [vmem:[#allocation8 + $0x70] sm:$0xff]  }
  0xcb   :  { %v6521_v34 = vld [vmem:[#allocation8 + $0xf0] sm:$0xff]  }
  0xcc   :  { %1758 = vmatpush1.bf16.msra.mxu0 %v5688_v41  ;;  %1799 = vmatpush1.bf16.msra.mxu1 %v5690_v42  ;;  %v104_v41 = vld [vmem:[#allocation5 + $0x98] sm:$0xff] }
  0xcd   :  { %1833 = vmatprep.subr.bf16.mxu0 %v5573_v44  ;;  %1874 = vmatprep.subr.bf16.mxu1 %v5575_v47  ;;  %v124_v42 = vld [vmem:[#allocation5 + $0x138] sm:$0xff]  ;;  %v5696_v44 = vcombine.low %v221_v30, %v241_v31  ;;  %v6517_v30 = vld [vmem:[#allocation8 + $0xe8] sm:$0xff]  }
  0xce   :  { %v5583_v47 = vcombine.high %v104_v41, %v124_v42  ;;  %v5582_v53 = vcombine.low %v104_v41, %v124_v42  ;;  %v6518_v31 = vld [vmem:[#allocation8 + $0x28] sm:$0xff]   ;;  %v6528_v41 = vld [vmem:[#allocation8 + $0x140] sm:$0xff]  }
  0xcf   :  { %5716 = vmatmul.mubr.msk.bf16.vlgmr.msra.gmra.mrb[24].mxu0 %vm1255_vm0, %v7060_v43  ;;  %5717 = vmatmul.mubr.msk.bf16.vlgmr.msra.gmra.mrb[24].mxu1 %vm1255_vm0, %v7060_v43  ;;  %v5654_v43 = vcombine.low %v180_v56, %v200_v57  ;;  %v203_v56 = vld [vmem:[#allocation5 + $0x3b0] sm:$0xff]  ;;  %v6529_v42 = vld [vmem:[#allocation8 + $0x1c0] sm:$0xff]  }
  0xd0   :  { %1834 = vmatpush1.bf16.msra.mxu0 %v5572_v50  ;;  %1875 = vmatpush1.bf16.msra.mxu1 %v5574_v51  ;;  %v144_v50 = vld [vmem:[#allocation5 + $0x1d8] sm:$0xff] }
  0xd1   :  { %1835 = vmatprep.subr.bf16.mxu0 %v5613_v52  ;;  %1876 = vmatprep.subr.bf16.mxu1 %v5615_v55  ;;  %v164_v51 = vld [vmem:[#allocation5 + $0x278] sm:$0xff]  ;;  %v5580_v52 = vcombine.low %v103_v38, %v123_v39  ;;  %v183_v55 = vld [vmem:[#allocation5 + $0x310] sm:$0xff]  ;;  %v6525_v38 = vld [vmem:[#allocation8 + $0xf8] sm:$0xff]  }
  0xd2   :  { %1865 = vmatprep.mubr.bf16.mxu0 %v6966_v0  ;;  %1906 = vmatprep.mubr.bf16.mxu1 %v6966_v0  ;;  %v5623_v57 = vcombine.high %v144_v50, %v164_v51  ;;  %v5622_v61 = vcombine.low %v144_v50, %v164_v51  ;;  %v5661_v62 = vcombine.high %v183_v55, %v203_v56  ;;  %v6526_v39 = vld [vmem:[#allocation8 + $0x38] sm:$0xff]  }
  0xd4   :  { %1836 = vmatpush1.bf16.msra.mxu0 %v5612_v58  ;;  %1877 = vmatpush1.bf16.msra.mxu1 %v5614_v59  ;;  %v184_v58 = vld [vmem:[#allocation5 + $0x318] sm:$0xff] }
  0xd5   :  { %1837 = vmatprep.subr.bf16.mxu0 %v5653_v60  ;;  %1878 = vmatprep.subr.bf16.mxu1 %v5655_v63  ;;  %v204_v59 = vld [vmem:[#allocation5 + $0x3b8] sm:$0xff]  ;;  %v5620_v60 = vcombine.low %v143_v48, %v163_v49  ;;  %v223_v63 = vld [vmem:[#allocation5 + $0x450] sm:$0xff] }
  0xd6   :  { %v5663_v2 = vcombine.high %v184_v58, %v204_v59  ;;  %v5662_v5 = vcombine.low %v184_v58, %v204_v59  ;;  %v5701_v6 = vcombine.high %v223_v63, %v243_v1  ;;  %v5700_v8 = vcombine.low %v223_v63, %v243_v1 }
  0xd8   :  { %1838 = vmatpush1.bf16.msra.mxu0 %v5652_v3  ;;  %1879 = vmatpush1.bf16.msra.mxu1 %v5654_v43  ;;  %v224_v3 = vld [vmem:[#allocation5 + $0x458] sm:$0xff] }
  0xd9   :  { %1839 = vmatprep.subr.bf16.mxu0 %v5693_v4  ;;  %1880 = vmatprep.subr.bf16.mxu1 %v5695_v7  ;;  %v244_v43 = vld [vmem:[#allocation5 + $0x4f8] sm:$0xff]  ;;  %v5660_v4 = vcombine.low %v183_v55, %v203_v56 }
  0xda   :  { %v5703_v7 = vcombine.high %v224_v3, %v244_v43  ;;  %v5702_v9 = vcombine.low %v224_v3, %v244_v43 }
  0xdc   :  { %1840 = vmatpush1.bf16.msra.mxu0 %v5692_v10  ;;  %1881 = vmatpush1.bf16.msra.mxu1 %v5694_v11  ;;  %v6496_v10 = vld [vmem:[#allocation8 + $0x40] sm:$0xff]  }
  0xdd   :  { %1915 = vmatprep.subr.bf16.mxu0 %v5577_v12  ;;  %1956 = vmatprep.subr.bf16.mxu1 %v5579_v15  ;;  %v6497_v11 = vld [vmem:[#allocation8 + $0xc0] sm:$0xff]   ;;  %v6502_v15 = vld [vmem:[#allocation8 + $0x8] sm:$0xff]  }
  0xde   :  { %v6498_v12 = vld [vmem:[#allocation8] sm:$0xff]  }
  0xdf   :  { %5718 = vmatmul.mubr.msk.bf16.vlgmr.msra.gmra.mrb[28].mxu0 %vm1255_vm0, %v7104_v25  ;;  %5719 = vmatmul.mubr.msk.bf16.vlgmr.msra.gmra.mrb[28].mxu1 %vm1255_vm0, %v7104_v25 }
  0xe0   :  { %1916 = vmatpush1.bf16.msra.mxu0 %v5576_v18  ;;  %1957 = vmatpush1.bf16.msra.mxu1 %v5578_v19  ;;  %v6505_v18 = vld [vmem:[#allocation8 + $0xd0] sm:$0xff]  }
  0xe1   :  { %1917 = vmatprep.subr.bf16.mxu0 %v5617_v20  ;;  %1958 = vmatprep.subr.bf16.mxu1 %v5619_v23  ;;  %v6506_v19 = vld [vmem:[#allocation8 + $0x10] sm:$0xff]   ;;  %v6510_v23 = vld [vmem:[#allocation8 + $0x18] sm:$0xff]  }
  0xe2   :  { %1947 = vmatprep.mubr.bf16.mxu0 %v6966_v0  ;;  %1988 = vmatprep.mubr.bf16.mxu1 %v6966_v0  ;;  %v6507_v20 = vld [vmem:[#allocation8 + $0x90] sm:$0xff]  }
  0xe4   :  { %1918 = vmatpush1.bf16.msra.mxu0 %v5616_v27  ;;  %1959 = vmatpush1.bf16.msra.mxu1 %v5618_v28  ;;  %v6514_v27 = vld [vmem:[#allocation8 + $0x20] sm:$0xff]  }
  0xe5   :  { %1919 = vmatprep.subr.bf16.mxu0 %v5657_v29  ;;  %1960 = vmatprep.subr.bf16.mxu1 %v5659_v32  ;;  %v6515_v28 = vld [vmem:[#allocation8 + $0xa0] sm:$0xff]   ;;  %v6516_v29 = vld [vmem:[#allocation8 + $0x68] sm:$0xff]  }
  0xe6   :  { %v6519_v32 = vld [vmem:[#allocation8 + $0xa8] sm:$0xff]  }
  0xe8   :  { %1920 = vmatpush1.bf16.msra.mxu0 %v5656_v35  ;;  %1961 = vmatpush1.bf16.msra.mxu1 %v5658_v36  ;;  %v6522_v35 = vld [vmem:[#allocation8 + $0x30] sm:$0xff]  }
  0xe9   :  { %1921 = vmatprep.subr.bf16.mxu0 %v5697_v37  ;;  %1962 = vmatprep.subr.bf16.mxu1 %v5699_v40  ;;  %v6523_v36 = vld [vmem:[#allocation8 + $0xb0] sm:$0xff]   ;;  %v6524_v37 = vld [vmem:[#allocation8 + $0x78] sm:$0xff]  }
  0xea   :  { %v6527_v40 = vld [vmem:[#allocation8 + $0xb8] sm:$0xff]  }
  0xec   :  { %1922 = vmatpush1.bf16.msra.mxu0 %v5696_v44  ;;  %1963 = vmatpush1.bf16.msra.mxu1 %v5698_v45  ;;  %v255_v44 = vlaneseq }
  0xed   :  { %1997 = vmatprep.subr.bf16.mxu0 %v5581_v46  ;;  %2038 = vmatprep.subr.bf16.mxu1 %v5583_v47  ;;  %v7124_v46 = vld [vmem:[#allocation7] sm:$0xff] }
  0xee   :  { %v7122_v45 = vshrl.u32 %v255_v44, 7 }
  0xef   :  { %5720 = vmatmul.mubr.msk.bf16.vlgmr.msra.gmra.mrb[32].mxu0 %vm1255_vm0, %v7104_v25  ;;  %5721 = vmatmul.mubr.msk.bf16.vlgmr.msra.gmra.mrb[32].mxu1 %vm1255_vm0, %v7104_v25 }
  0xf0   :  { %1998 = vmatpush1.bf16.msra.mxu0 %v5580_v52  ;;  %2039 = vmatpush1.bf16.msra.mxu1 %v5582_v53  ;;  %v7127_v47 = vsub.s32 0, %v7122_v45  ;;  %v7130_v48 = vsub.s32 2, %v7122_v45  ;;  %v7133_v49 = vsub.s32 1, %v7122_v45  ;;  %v7136_v50 = vsub.s32 3, %v7122_v45 }
  0xf1   :  { %1999 = vmatprep.subr.bf16.mxu0 %v5621_v54  ;;  %2040 = vmatprep.subr.bf16.mxu1 %v5623_v57 }
  0xf2   :  { %2029 = vmatprep.mubr.bf16.mxu0 %v6966_v0  ;;  %2070 = vmatprep.mubr.bf16.mxu1 %v6966_v0  ;;  %v6499_v0 = vld [vmem:[#allocation8 + $0x80] sm:$0xff]   ;;  %v258_v51 = vrot.slane %v7124_v46, %v7127_v47  ;;  %v266_v52 = vrot.slane %v7124_v46, %v7130_v48  ;;  %v262_v53 = vrot.slane %v7124_v46, %v7133_v49 }
  0xf3   :  { %v270_v54 = vrot.slane %v7124_v46, %v7136_v50 }
  0xf4   :  { %2000 = vmatpush1.bf16.msra.mxu0 %v5620_v60  ;;  %2041 = vmatpush1.bf16.msra.mxu1 %v5622_v61 }
  0xf5   :  { %2001 = vmatprep.subr.bf16.mxu0 %v5661_v62  ;;  %2042 = vmatprep.subr.bf16.mxu1 %v5663_v2 }
  0xf8   :  { %2002 = vmatpush1.bf16.msra.mxu0 %v5660_v4  ;;  %2043 = vmatpush1.bf16.msra.mxu1 %v5662_v5 }
  0xf9   :  { %2003 = vmatprep.subr.bf16.mxu0 %v5701_v6  ;;  %2044 = vmatprep.subr.bf16.mxu1 %v5703_v7  ;;  %v6530_v6 = vld [vmem:[#allocation8 + $0x100] sm:$0xff]  }
  0xfc   :  { %2004 = vmatpush1.bf16.msra.mxu0 %v5700_v8  ;;  %2045 = vmatpush1.bf16.msra.mxu1 %v5702_v9  ;;  %v6531_v8 = vld [vmem:[#allocation8 + $0x180] sm:$0xff]   ;;  %v6532_v9 = vld [vmem:[#allocation8 + $0x148] sm:$0xff]  }
  0xfd   :  { %6045 = vmatprep.subr.bf16.mxu0 %v6496_v10  ;;  %6067 = vmatprep.subr.bf16.mxu1 %v6497_v11 }
  0xff   :  { %5722 = vmatmul.mubr.msk.bf16.vlgmr.msra.gmra.mrb[36].mxu0 %vm1255_vm0, %v7104_v25  ;;  %5723 = vmatmul.mubr.msk.bf16.vlgmr.msra.gmra.mrb[36].mxu1 %vm1255_vm0, %v7104_v25  ;;  %v6513_v25 = vld [vmem:[#allocation8 + $0xe0] sm:$0xff]  }
 0x100   :  { %6046 = vmatpush3.bf16.msra.mxu0 %v6498_v12  ;;  %6068 = vmatpush3.bf16.msra.mxu1 %v6499_v0 }
 0x101   :  { %6047 = vmatprep.subr.bf16.mxu0 %v6500_v13  ;;  %6069 = vmatprep.subr.bf16.mxu1 %v6501_v14  ;;  %v6533_v13 = vld [vmem:[#allocation8 + $0x1c8] sm:$0xff]  }
 0x102   :  { %v6534_v14 = vld [vmem:[#allocation8 + $0x108] sm:$0xff]  }
 0x104   :  { %6048 = vmatpush3.bf16.msra.mxu0 %v6502_v15  ;;  %6070 = vmatpush3.bf16.msra.mxu1 %v6503_v16  ;;  %v6535_v15 = vld [vmem:[#allocation8 + $0x188] sm:$0xff]   ;;  %v6536_v16 = vld [vmem:[#allocation8 + $0x150] sm:$0xff]  }
 0x105   :  { %6049 = vmatprep.subr.bf16.mxu0 %v6504_v17  ;;  %6071 = vmatprep.subr.bf16.mxu1 %v6505_v18  ;;  %v7147_v17 = vsub.s32 5, %v7122_v45  ;;  %v7150_v18 = vsub.s32 7, %v7122_v45 }
 0x108   :  { %6050 = vmatpush3.bf16.msra.mxu0 %v6506_v19  ;;  %6072 = vmatpush3.bf16.msra.mxu1 %v6507_v20  ;;  %v6537_v19 = vld [vmem:[#allocation8 + $0x1d0] sm:$0xff]  }
 0x109   :  { %6051 = vmatprep.subr.bf16.mxu0 %v6508_v21  ;;  %6073 = vmatprep.subr.bf16.mxu1 %v6509_v22  ;;  %v6538_v20 = vld [vmem:[#allocation8 + $0x110] sm:$0xff]   ;;  %v278_v21 = vrot.slane %v7124_v46, %v7147_v17 }
 0x10a   :  { %v6539_v22 = vld [vmem:[#allocation8 + $0x190] sm:$0xff]  }
 0x10c   :  { %6052 = vmatpush3.bf16.msra.mxu0 %v6510_v23  ;;  %6074 = vmatpush3.bf16.msra.mxu1 %v6511_v24  ;;  %v6540_v23 = vld [vmem:[#allocation8 + $0x158] sm:$0xff]   ;;  %v286_v24 = vrot.slane %v7124_v46, %v7150_v18 }
 0x10d   :  { %6053 = vmatprep.subr.bf16.mxu0 %v6512_v26  ;;  %6075 = vmatprep.subr.bf16.mxu1 %v6513_v25  ;;  %v6541_v26 = vld [vmem:[#allocation8 + $0x1d8] sm:$0xff]  }
 0x110   :  { %6054 = vmatpush3.bf16.msra.mxu0 %v6514_v27  ;;  %6076 = vmatpush3.bf16.msra.mxu1 %v6515_v28 }
 0x111   :  { %6055 = vmatprep.subr.bf16.mxu0 %v6516_v29  ;;  %6077 = vmatprep.subr.bf16.mxu1 %v6517_v30  ;;  %v6542_v29 = vld [vmem:[#allocation8 + $0x118] sm:$0xff]  }
 0x114   :  { %6056 = vmatpush3.bf16.msra.mxu0 %v6518_v31  ;;  %6078 = vmatpush3.bf16.msra.mxu1 %v6519_v32 }
 0x115   :  { %6057 = vmatprep.subr.bf16.mxu0 %v6520_v33  ;;  %6079 = vmatprep.subr.bf16.mxu1 %v6521_v34  ;;  %v6543_v33 = vld [vmem:[#allocation8 + $0x198] sm:$0xff]   ;;  %v6544_v34 = vld [vmem:[#allocation8 + $0x160] sm:$0xff]  }
 0x118   :  { %6058 = vmatpush3.bf16.msra.mxu0 %v6522_v35  ;;  %6080 = vmatpush3.bf16.msra.mxu1 %v6523_v36 }
 0x119   :  { %6059 = vmatprep.subr.bf16.mxu0 %v6524_v37  ;;  %6081 = vmatprep.subr.bf16.mxu1 %v6525_v38  ;;  %v6545_v38 = vld [vmem:[#allocation8 + $0x1e0] sm:$0xff]  }
 0x11c   :  { %6060 = vmatpush3.bf16.msra.mxu0 %v6526_v39  ;;  %6082 = vmatpush3.bf16.msra.mxu1 %v6527_v40  ;;  %v7157_v39 = vsub.s32 4, %v7122_v45 }
 0x11d   :  { %6089 = vmatprep.subr.bf16.mxu0 %v6528_v41  ;;  %6111 = vmatprep.subr.bf16.mxu1 %v6529_v42  ;;  %v6546_v42 = vld [vmem:[#allocation8 + $0x120] sm:$0xff]  }
 0x142   :  { %v1293_v55 = vpop.f32.mrb[0].mxu0  ;;  %v1334_v57 = vpop.f32.mrb[0].mxu1 }
 0x143   :  { %v1294_v56 = vadd.f32 %v1293_v55, %v258_v51  ;;  %v1295_v58 = vpop.f32.mrb[1].mxu0  ;;  %v1335_v59 = vadd.f32 %v1334_v57, %v266_v52  ;;  %v1336_v61 = vpop.f32.mrb[1].mxu1  ;;  %v6547_v51 = vld [vmem:[#allocation8 + $0x1a0] sm:$0xff]   ;;  %v6549_v55 = vld [vmem:[#allocation8 + $0x1e8] sm:$0xff]   ;;  %v274_v57 = vrot.slane %v7124_v46, %v7157_v39 }
 0x144   :  { %v1296_v60 = vadd.f32 %v1295_v58, %v262_v53  ;;  %v1297_v62 = vpop.f32.mrb[2].mxu0  ;;  %v1337_v1 = vadd.f32 %v1336_v61, %v270_v54  ;;  %v1338_v2 = vpop.f32.mrb[2].mxu1  ;;  %v7160_v53 = vsub.s32 6, %v7122_v45  ;;  %v6548_v54 = vld [vmem:[#allocation8 + $0x168] sm:$0xff]   ;;  %v6552_v61 = vld [vmem:[#allocation8 + $0x170] sm:$0xff]  }
 0x145   :  { %v2079_v63 = vmax.f32 %v1294_v56, 0.0  ;;  %v1298_v3 = vpop.f32.mrb[3].mxu0  ;;  %v2081_v43 = vmax.f32 %v1335_v59, 0.0  ;;  %v1339_v5 = vpop.f32.mrb[3].mxu1  ;;  %v6550_v58 = vld [vmem:[#allocation8 + $0x128] sm:$0xff]   ;;  %v6553_v45 = vld [vmem:[#allocation8 + $0x1f0] sm:$0xff]  }
 0x146   :  { %v2080_v4 = vmax.f32 %v1296_v60, 0.0  ;;  %v2082_v7 = vmax.f32 %v1337_v1, 0.0  ;;  %v6551_v59 = vld [vmem:[#allocation8 + $0x1a8] sm:$0xff]   ;;  %v282_v60 = vrot.slane %v7124_v46, %v7160_v53  ;;  %v7166_v62 = vld [vmem:[#allocation7 + $0x8] sm:$0xff]  ;;  %v6554_v1 = vld [vmem:[#allocation8 + $0x130] sm:$0xff]  }
 0x147   :  { %v2121_v10 = vpack.c.bf16 %v2081_v43, %v2081_v43  ;;  %v2119_v12 = vpack.c.bf16 %v2079_v63, %v2079_v63  ;;  %v6555_v3 = vld [vmem:[#allocation8 + $0x1b0] sm:$0xff]   ;;  %v294_v43 = vrot.slane %v7166_v62, %v7133_v49  ;;  %v6557_v5 = vld [vmem:[#allocation8 + $0x1f8] sm:$0xff]   ;;  %v302_v46 = vrot.slane %v7166_v62, %v7136_v50 }
 0x148   :  { %v2120_v11 = vpack.c.bf16 %v2080_v4, %v2080_v4  ;;  %v2122_v0 = vpack.c.bf16 %v2082_v7, %v2082_v7  ;;  %v6556_v4 = vld [vmem:[#allocation8 + $0x178] sm:$0xff]  }
 0x14a   :  { %4758 = vmatprep.mubr.bf16.mxu0 %v2120_v11  ;;  %4798 = vmatprep.mubr.bf16.mxu1 %v2122_v0  ;;  %v6558_v11 = vld [vmem:[#allocation8 + $0x138] sm:$0xff]  }
 0x14b   :  { %4759 = vmatmul.mubr.bf16.vlgmr.msra.gmra.mrb[40].mxu0 %v2119_v12  ;;  %4799 = vmatmul.mubr.bf16.vlgmr.msra.gmra.mrb[40].mxu1 %v2121_v10 }
 0x14c   :  { %6090 = vmatpush3.bf16.msra.mxu0 %v6530_v6  ;;  %6112 = vmatpush3.bf16.msra.mxu1 %v6531_v8 }
 0x14d   :  { %6091 = vmatprep.subr.bf16.mxu0 %v6532_v9  ;;  %6113 = vmatprep.subr.bf16.mxu1 %v6533_v13 }
 0x150   :  { %6092 = vmatpush3.bf16.msra.mxu0 %v6534_v14  ;;  %6114 = vmatpush3.bf16.msra.mxu1 %v6535_v15  ;;  %v6559_v14 = vld [vmem:[#allocation8 + $0x1b8] sm:$0xff]   ;;  %v6560_v15 = vld [vmem:[#allocation8 + $0x240] sm:$0xff]  }
 0x151   :  { %6093 = vmatprep.subr.bf16.mxu0 %v6536_v16  ;;  %6115 = vmatprep.subr.bf16.mxu1 %v6537_v19 }
 0x152   :  { %v1375_v25 = vpop.f32.mrb[4].mxu0  ;;  %v1416_v28 = vpop.f32.mrb[4].mxu1 }
 0x153   :  { %v1377_v27 = vpop.f32.mrb[5].mxu0  ;;  %v1418_v32 = vpop.f32.mrb[5].mxu1  ;;  %v1376_v63 = vadd.f32 %v1375_v25, %v274_v57  ;;  %v1417_v2 = vadd.f32 %v1416_v28, %v282_v60  ;;  %v6563_v25 = vld [vmem:[#allocation8 + $0x280] sm:$0xff]  }
 0x154   :  { %6094 = vmatpush3.bf16.msra.mxu0 %v6538_v20  ;;  %v1378_v30 = vadd.f32 %v1377_v27, %v278_v21  ;;  %v1379_v31 = vpop.f32.mrb[6].mxu0  ;;  %6116 = vmatpush3.bf16.msra.mxu1 %v6539_v22  ;;  %v1419_v36 = vadd.f32 %v1418_v32, %v286_v24  ;;  %v1420_v37 = vpop.f32.mrb[6].mxu1  ;;  %v6561_v21 = vld [vmem:[#allocation8 + $0x2c0] sm:$0xff]   ;;  %v6564_v27 = vld [vmem:[#allocation8 + $0x248] sm:$0xff]  }
 0x155   :  { %6095 = vmatprep.subr.bf16.mxu0 %v6540_v23  ;;  %v1380_v35 = vpop.f32.mrb[7].mxu0  ;;  %6117 = vmatprep.subr.bf16.mxu1 %v6541_v26  ;;  %v1421_v41 = vpop.f32.mrb[7].mxu1  ;;  %v2083_v6 = vmax.f32 %v1376_v63, 0.0  ;;  %v2085_v10 = vmax.f32 %v1417_v2, 0.0  ;;  %v6562_v22 = vld [vmem:[#allocation8 + $0x200] sm:$0xff]   ;;  %v6570_v37 = vld [vmem:[#allocation8 + $0x210] sm:$0xff]  }
 0x156   :  { %v2084_v40 = vmax.f32 %v1378_v30, 0.0  ;;  %v2086_v44 = vmax.f32 %v1419_v36, 0.0  ;;  %v6565_v30 = vld [vmem:[#allocation8 + $0x2c8] sm:$0xff]   ;;  %v6568_v35 = vld [vmem:[#allocation8 + $0x250] sm:$0xff]   ;;  %v6573_v41 = vld [vmem:[#allocation8 + $0x2d8] sm:$0xff]  }
 0x157   :  { %v2123_v26 = vpack.c.bf16 %v2083_v6, %v2083_v6  ;;  %v6569_v36 = vld [vmem:[#allocation8 + $0x2d0] sm:$0xff]   ;;  %v6576_v57 = vld [vmem:[#allocation8 + $0x260] sm:$0xff]   ;;  %v6581_v2 = vld [vmem:[#allocation8 + $0x2e8] sm:$0xff]  }
 0x158   :  { %6096 = vmatpush3.bf16.msra.mxu0 %v6542_v29  ;;  %v2124_v52 = vpack.c.bf16 %v2084_v40, %v2084_v40  ;;  %6118 = vmatpush3.bf16.msra.mxu1 %v6543_v33  ;;  %v2126_v56 = vpack.c.bf16 %v2086_v44, %v2086_v44  ;;  %v2125_v29 = vpack.c.bf16 %v2085_v10, %v2085_v10  ;;  %v6566_v33 = vld [vmem:[#allocation8 + $0x208] sm:$0xff]   ;;  %v6572_v40 = vld [vmem:[#allocation8 + $0x258] sm:$0xff]   ;;  %v6577_v60 = vld [vmem:[#allocation8 + $0x2e0] sm:$0xff]  }
 0x159   :  { %6097 = vmatprep.subr.bf16.mxu0 %v6544_v34  ;;  %6119 = vmatprep.subr.bf16.mxu1 %v6545_v38  ;;  %v6567_v34 = vld [vmem:[#allocation8 + $0x288] sm:$0xff]   ;;  %v6571_v38 = vld [vmem:[#allocation8 + $0x290] sm:$0xff]   ;;  %v6579_v63 = vld [vmem:[#allocation8 + $0x2a0] sm:$0xff]  }
 0x15a   :  { %4838 = vmatprep.mubr.bf16.mxu0 %v2124_v52  ;;  %4878 = vmatprep.mubr.bf16.mxu1 %v2126_v56  ;;  %v6574_v52 = vld [vmem:[#allocation8 + $0x218] sm:$0xff]   ;;  %v6585_v6 = vld [vmem:[#allocation8 + $0x2f0] sm:$0xff]  }
 0x15b   :  { %v6575_v56 = vld [vmem:[#allocation8 + $0x298] sm:$0xff]   ;;  %v6586_v10 = vld [vmem:[#allocation8 + $0x230] sm:$0xff]  }
 0x15c   :  { %6098 = vmatpush3.bf16.msra.mxu0 %v6546_v42  ;;  %6120 = vmatpush3.bf16.msra.mxu1 %v6547_v51 }
 0x15d   :  { %6099 = vmatprep.subr.bf16.mxu0 %v6548_v54  ;;  %6121 = vmatprep.subr.bf16.mxu1 %v6549_v55 }
 0x160   :  { %6100 = vmatpush3.bf16.msra.mxu0 %v6550_v58  ;;  %6122 = vmatpush3.bf16.msra.mxu1 %v6551_v59 }
 0x161   :  { %6101 = vmatprep.subr.bf16.mxu0 %v6552_v61  ;;  %6123 = vmatprep.subr.bf16.mxu1 %v6553_v45  ;;  %v6578_v45 = vld [vmem:[#allocation8 + $0x220] sm:$0xff]  }
 0x162   :  { %v7172_v7 = vpop.f32.mrb[8].mxu0  ;;  %v7174_v9 = vpop.f32.mrb[8].mxu1 }
 0x163   :  { %v1459_v8 = vpop.f32.mrb[9].mxu0  ;;  %v1500_v13 = vpop.f32.mrb[9].mxu1 }
 0x164   :  { %6102 = vmatpush3.bf16.msra.mxu0 %v6554_v1  ;;  %v1460_v12 = vadd.f32 %v1459_v8, %v294_v43  ;;  %v1461_v0 = vpop.f32.mrb[10].mxu0  ;;  %6124 = vmatpush3.bf16.msra.mxu1 %v6555_v3  ;;  %v1501_v19 = vadd.f32 %v1500_v13, %v302_v46  ;;  %v1502_v20 = vpop.f32.mrb[10].mxu1  ;;  %v6580_v1 = vld [vmem:[#allocation8 + $0x268] sm:$0xff]   ;;  %v290_v3 = vrot.slane %v7166_v62, %v7127_v47  ;;  %v6584_v46 = vld [vmem:[#allocation8 + $0x270] sm:$0xff]  }
 0x165   :  { %6103 = vmatprep.subr.bf16.mxu0 %v6556_v4  ;;  %v1462_v16 = vpop.f32.mrb[11].mxu0  ;;  %6125 = vmatprep.subr.bf16.mxu1 %v6557_v5  ;;  %v1503_v24 = vpop.f32.mrb[11].mxu1  ;;  %v6582_v43 = vld [vmem:[#allocation8 + $0x228] sm:$0xff]   ;;  %v298_v5 = vrot.slane %v7166_v62, %v7130_v48  ;;  %v6587_v13 = vld [vmem:[#allocation8 + $0x2b0] sm:$0xff]  }
 0x166   :  { %v2088_v23 = vmax.f32 %v1460_v12, 0.0  ;;  %v2090_v28 = vmax.f32 %v1501_v19, 0.0  ;;  %v6583_v4 = vld [vmem:[#allocation8 + $0x2a8] sm:$0xff]   ;;  %v1458_v8 = vadd.f32 %v7172_v7, %v290_v3  ;;  %v318_v12 = vrot.slane %v7166_v62, %v7150_v18  ;;  %v6590_v24 = vld [vmem:[#allocation8 + $0x238] sm:$0xff]  }
 0x167   :  { %v1499_v0 = vadd.f32 %v7174_v9, %v298_v5 }
 0x168   :  { %6104 = vmatpush3.bf16.msra.mxu0 %v6558_v11  ;;  %6126 = vmatpush3.bf16.msra.mxu1 %v6559_v14  ;;  %v2128_v31 = vpack.c.bf16 %v2088_v23, %v2088_v23  ;;  %v2130_v32 = vpack.c.bf16 %v2090_v28, %v2090_v28  ;;  %v310_v11 = vrot.slane %v7166_v62, %v7147_v17  ;;  %v6588_v14 = vld [vmem:[#allocation8 + $0x278] sm:$0xff]   ;;  %v2087_v16 = vmax.f32 %v1458_v8, 0.0 }
 0x169   :  { %6133 = vmatprep.subr.bf16.mxu0 %v6560_v15  ;;  %6155 = vmatprep.subr.bf16.mxu1 %v6561_v21  ;;  %v6589_v15 = vld [vmem:[#allocation8 + $0x2f8] sm:$0xff]   ;;  %v2089_v23 = vmax.f32 %v1499_v0, 0.0  ;;  %v6613_v0 = vld [vmem:[#allocation8 + $0x3e8] sm:$0xff]  }
 0x16b   :  { %4839 = vmatmul.mubr.bf16.vlgmr.msra.gmra.mrb[44].mxu0 %v2123_v26  ;;  %4879 = vmatmul.mubr.bf16.vlgmr.msra.gmra.mrb[44].mxu1 %v2125_v29 }
 0x16c   :  { %6134 = vmatpush3.bf16.msra.mxu0 %v6562_v22  ;;  %6156 = vmatpush3.bf16.msra.mxu1 %v6563_v25  ;;  %v6591_v25 = vld [vmem:[#allocation8 + $0x2b8] sm:$0xff]  }
 0x16d   :  { %6135 = vmatprep.subr.bf16.mxu0 %v6564_v27  ;;  %6157 = vmatprep.subr.bf16.mxu1 %v6565_v30  ;;  %v6592_v27 = vld [vmem:[#allocation8 + $0x340] sm:$0xff]  }
 0x16e   :  { %4918 = vmatprep.mubr.bf16.mxu0 %v2128_v31  ;;  %4958 = vmatprep.mubr.bf16.mxu1 %v2130_v32  ;;  %v6593_v30 = vld [vmem:[#allocation8 + $0x3c0] sm:$0xff]  }
 0x16f   :  { %v6594_v31 = vld [vmem:[#allocation8 + $0x300] sm:$0xff]  }
 0x170   :  { %6136 = vmatpush3.bf16.msra.mxu0 %v6566_v33  ;;  %6158 = vmatpush3.bf16.msra.mxu1 %v6567_v34  ;;  %v2127_v34 = vpack.c.bf16 %v2087_v16, %v2087_v16  ;;  %v6616_v16 = vld [vmem:[#allocation8 + $0x370] sm:$0xff]  }
 0x171   :  { %6137 = vmatprep.subr.bf16.mxu0 %v6568_v35  ;;  %6159 = vmatprep.subr.bf16.mxu1 %v6569_v36  ;;  %v6595_v35 = vld [vmem:[#allocation8 + $0x380] sm:$0xff]   ;;  %v6596_v36 = vld [vmem:[#allocation8 + $0x348] sm:$0xff]  }
 0x172   :  { %v7176_v42 = vpop.f32.mrb[12].mxu0  ;;  %v7178_v51 = vpop.f32.mrb[12].mxu1 }
 0x173   :  { %v1541_v44 = vpop.f32.mrb[13].mxu0  ;;  %v1582_v55 = vpop.f32.mrb[13].mxu1 }
 0x174   :  { %6138 = vmatpush3.bf16.msra.mxu0 %v6570_v37  ;;  %v1543_v54 = vpop.f32.mrb[14].mxu0  ;;  %6160 = vmatpush3.bf16.msra.mxu1 %v6571_v38  ;;  %v1584_v59 = vpop.f32.mrb[14].mxu1  ;;  %v1542_v19 = vadd.f32 %v1541_v44, %v310_v11  ;;  %v1583_v7 = vadd.f32 %v1582_v55, %v318_v12  ;;  %v2129_v38 = vpack.c.bf16 %v2089_v23, %v2089_v23  ;;  %v6598_v44 = vld [vmem:[#allocation8 + $0x308] sm:$0xff]   ;;  %v6600_v55 = vld [vmem:[#allocation8 + $0x350] sm:$0xff]   ;;  %v6611_v11 = vld [vmem:[#allocation8 + $0x3a0] sm:$0xff]  }
 0x175   :  { %6139 = vmatprep.subr.bf16.mxu0 %v6572_v40  ;;  %v1544_v58 = vpop.f32.mrb[15].mxu0  ;;  %6161 = vmatprep.subr.bf16.mxu1 %v6573_v41  ;;  %v1585_v61 = vpop.f32.mrb[15].mxu1  ;;  %v6597_v40 = vld [vmem:[#allocation8 + $0x3c8] sm:$0xff]   ;;  %v6604_v59 = vld [vmem:[#allocation8 + $0x358] sm:$0xff]   ;;  %v314_v23 = vrot.slane %v7166_v62, %v7160_v53 }
 0x176   :  { %v2092_v32 = vmax.f32 %v1542_v19, 0.0  ;;  %v2094_v37 = vmax.f32 %v1583_v7, 0.0  ;;  %v6599_v54 = vld [vmem:[#allocation8 + $0x388] sm:$0xff]   ;;  %v6603_v58 = vld [vmem:[#allocation8 + $0x390] sm:$0xff]   ;;  %v306_v7 = vrot.slane %v7166_v62, %v7157_v39 }
 0x177   :  { %v6612_v12 = vld [vmem:[#allocation8 + $0x368] sm:$0xff]   ;;  %v6617_v19 = vld [vmem:[#allocation8 + $0x3f0] sm:$0xff]  }
 0x178   :  { %6140 = vmatpush3.bf16.msra.mxu0 %v6574_v52  ;;  %6162 = vmatpush3.bf16.msra.mxu1 %v6575_v56  ;;  %v2132_v41 = vpack.c.bf16 %v2092_v32, %v2092_v32  ;;  %v2134_v52 = vpack.c.bf16 %v2094_v37, %v2094_v37  ;;  %v6601_v56 = vld [vmem:[#allocation8 + $0x3d0] sm:$0xff]  }
 0x179   :  { %6141 = vmatprep.subr.bf16.mxu0 %v6576_v57  ;;  %6163 = vmatprep.subr.bf16.mxu1 %v6577_v60  ;;  %v6602_v57 = vld [vmem:[#allocation8 + $0x310] sm:$0xff]   ;;  %v6605_v60 = vld [vmem:[#allocation8 + $0x3d8] sm:$0xff]  }
 0x17c   :  { %6142 = vmatpush3.bf16.msra.mxu0 %v6578_v45  ;;  %6164 = vmatpush3.bf16.msra.mxu1 %v6579_v63 }
 0x17d   :  { %6143 = vmatprep.subr.bf16.mxu0 %v6580_v1  ;;  %6165 = vmatprep.subr.bf16.mxu1 %v6581_v2  ;;  %v6606_v1 = vld [vmem:[#allocation8 + $0x318] sm:$0xff]  }
 0x180   :  { %6144 = vmatpush3.bf16.msra.mxu0 %v6582_v43  ;;  %6166 = vmatpush3.bf16.msra.mxu1 %v6583_v4  ;;  %v6607_v43 = vld [vmem:[#allocation8 + $0x398] sm:$0xff]   ;;  %v6608_v4 = vld [vmem:[#allocation8 + $0x360] sm:$0xff]  }
 0x181   :  { %6145 = vmatprep.subr.bf16.mxu0 %v6584_v46  ;;  %6167 = vmatprep.subr.bf16.mxu1 %v6585_v6  ;;  %v6609_v6 = vld [vmem:[#allocation8 + $0x3e0] sm:$0xff]  }
 0x182   :  { %v7190_v20 = vpop.f32.mrb[16].mxu0  ;;  %v7194_v22 = vpop.f32.mrb[16].mxu1 }
 0x183   :  { %v7192_v21 = vpop.f32.mrb[17].mxu0  ;;  %v7196_v9 = vpop.f32.mrb[17].mxu1 }
 0x184   :  { %6146 = vmatpush3.bf16.msra.mxu0 %v6586_v10  ;;  %v1625_v26 = vpop.f32.mrb[18].mxu0  ;;  %6168 = vmatpush3.bf16.msra.mxu1 %v6587_v13  ;;  %v1666_v29 = vpop.f32.mrb[18].mxu1  ;;  %v6610_v10 = vld [vmem:[#allocation8 + $0x320] sm:$0xff]   ;;  %v6614_v13 = vld [vmem:[#allocation8 + $0x328] sm:$0xff]  }
 0x185   :  { %6147 = vmatprep.subr.bf16.mxu0 %v6588_v14  ;;  %v1626_v28 = vpop.f32.mrb[19].mxu0  ;;  %6169 = vmatprep.subr.bf16.mxu1 %v6589_v15  ;;  %v1667_v33 = vpop.f32.mrb[19].mxu1  ;;  %v7206_v14 = vld [vmem:[#allocation7 + $0x10] sm:$0xff]  ;;  %v6618_v26 = vld [vmem:[#allocation8 + $0x330] sm:$0xff]   ;;  %v1540_v29 = vadd.f32 %v7176_v42, %v306_v7 }
 0x186   :  { %v6615_v15 = vld [vmem:[#allocation8 + $0x3a8] sm:$0xff]   ;;  %v6620_v28 = vld [vmem:[#allocation8 + $0x378] sm:$0xff]  }
 0x188   :  { %6148 = vmatpush3.bf16.msra.mxu0 %v6590_v24  ;;  %6170 = vmatpush3.bf16.msra.mxu1 %v6591_v25  ;;  %v326_v24 = vrot.slane %v7206_v14, %v7133_v49  ;;  %v334_v25 = vrot.slane %v7206_v14, %v7136_v50 }
 0x189   :  { %6177 = vmatprep.subr.bf16.mxu0 %v6592_v27  ;;  %6199 = vmatprep.subr.bf16.mxu1 %v6593_v30  ;;  %v6619_v27 = vld [vmem:[#allocation8 + $0x3b0] sm:$0xff]   ;;  %v1581_v30 = vadd.f32 %v7178_v51, %v314_v23  ;;  %v6623_v51 = vld [vmem:[#allocation8 + $0x3b8] sm:$0xff]  }
 0x18a   :  { %v1624_v62 = vadd.f32 %v7192_v21, %v326_v24  ;;  %v1665_v33 = vadd.f32 %v7196_v9, %v334_v25  ;;  %v6626_v9 = vld [vmem:[#allocation8 + $0x400] sm:$0xff]   ;;  %v6639_v23 = vld [vmem:[#allocation8 + $0x498] sm:$0xff]  }
 0x18b   :  { %4919 = vmatmul.mubr.bf16.vlgmr.msra.gmra.mrb[48].mxu0 %v2127_v34  ;;  %4959 = vmatmul.mubr.bf16.vlgmr.msra.gmra.mrb[48].mxu1 %v2129_v38  ;;  %v2091_v38 = vmax.f32 %v1540_v29, 0.0  ;;  %v6640_v24 = vld [vmem:[#allocation8 + $0x460] sm:$0xff]  }
 0x18c   :  { %6178 = vmatpush3.bf16.msra.mxu0 %v6594_v31  ;;  %6200 = vmatpush3.bf16.msra.mxu1 %v6595_v35  ;;  %v6621_v31 = vld [vmem:[#allocation8 + $0x3f8] sm:$0xff]   ;;  %v6642_v29 = vld [vmem:[#allocation8 + $0x420] sm:$0xff]  }
 0x18d   :  { %6179 = vmatprep.subr.bf16.mxu0 %v6596_v36  ;;  %6201 = vmatprep.subr.bf16.mxu1 %v6597_v40  ;;  %v6622_v36 = vld [vmem:[#allocation8 + $0x338] sm:$0xff]   ;;  %v6624_v40 = vld [vmem:[#allocation8 + $0x440] sm:$0xff]  }
 0x18e   :  { %4998 = vmatprep.mubr.bf16.mxu0 %v2132_v41  ;;  %5038 = vmatprep.mubr.bf16.mxu1 %v2134_v52  ;;  %v6625_v41 = vld [vmem:[#allocation8 + $0x4c0] sm:$0xff]   ;;  %v2093_v52 = vmax.f32 %v1581_v30, 0.0 }
 0x18f   :  { %v6643_v30 = vld [vmem:[#allocation8 + $0x4a0] sm:$0xff]  }
 0x190   :  { %6180 = vmatpush3.bf16.msra.mxu0 %v6598_v44  ;;  %6202 = vmatpush3.bf16.msra.mxu1 %v6599_v54  ;;  %v2096_v54 = vmax.f32 %v1624_v62, 0.0  ;;  %v6645_v62 = vld [vmem:[#allocation8 + $0x4e8] sm:$0xff]  }
 0x191   :  { %6181 = vmatprep.subr.bf16.mxu0 %v6600_v55  ;;  %6203 = vmatprep.subr.bf16.mxu1 %v6601_v56  ;;  %v6627_v56 = vld [vmem:[#allocation8 + $0x480] sm:$0xff]  }
 0x192   :  { %v7198_v61 = vpop.f32.mrb[20].mxu0  ;;  %v7202_v63 = vpop.f32.mrb[20].mxu1 }
 0x193   :  { %v7200_v45 = vpop.f32.mrb[21].mxu0  ;;  %v7204_v3 = vpop.f32.mrb[21].mxu1 }
 0x194   :  { %6182 = vmatpush3.bf16.msra.mxu0 %v6602_v57  ;;  %v1707_v2 = vpop.f32.mrb[22].mxu0  ;;  %6204 = vmatpush3.bf16.msra.mxu1 %v6603_v58  ;;  %v1748_v46 = vpop.f32.mrb[22].mxu1  ;;  %v2098_v57 = vmax.f32 %v1665_v33, 0.0  ;;  %v6628_v58 = vld [vmem:[#allocation8 + $0x448] sm:$0xff]  }
 0x195   :  { %6183 = vmatprep.subr.bf16.mxu0 %v6604_v59  ;;  %v1708_v5 = vpop.f32.mrb[23].mxu0  ;;  %6205 = vmatprep.subr.bf16.mxu1 %v6605_v60  ;;  %v1749_v8 = vpop.f32.mrb[23].mxu1  ;;  %v6629_v59 = vld [vmem:[#allocation8 + $0x4c8] sm:$0xff]   ;;  %v2131_v60 = vpack.c.bf16 %v2091_v38, %v2091_v38  ;;  %v2136_v2 = vpack.c.bf16 %v2096_v54, %v2096_v54  ;;  %v6632_v46 = vld [vmem:[#allocation8 + $0x450] sm:$0xff]  }
 0x196   :  { %v6631_v5 = vld [vmem:[#allocation8 + $0x488] sm:$0xff]   ;;  %v6634_v8 = vld [vmem:[#allocation8 + $0x410] sm:$0xff]  }
 0x197   :  { %v6646_v33 = vld [vmem:[#allocation8 + $0x428] sm:$0xff]   ;;  %v6649_v38 = vld [vmem:[#allocation8 + $0x4f0] sm:$0xff]  }
 0x198   :  { %6184 = vmatpush3.bf16.msra.mxu0 %v6606_v1  ;;  %6206 = vmatpush3.bf16.msra.mxu1 %v6607_v43  ;;  %v2133_v1 = vpack.c.bf16 %v2093_v52, %v2093_v52  ;;  %v2138_v43 = vpack.c.bf16 %v2098_v57, %v2098_v57  ;;  %v6651_v52 = vld [vmem:[#allocation8 + $0x4b0] sm:$0xff]  }
 0x199   :  { %6185 = vmatprep.subr.bf16.mxu0 %v6608_v4  ;;  %6207 = vmatprep.subr.bf16.mxu1 %v6609_v6  ;;  %v6630_v4 = vld [vmem:[#allocation8 + $0x408] sm:$0xff]   ;;  %v6633_v6 = vld [vmem:[#allocation8 + $0x4d0] sm:$0xff]  }
 0x19c   :  { %6186 = vmatpush3.bf16.msra.mxu0 %v6610_v10  ;;  %6208 = vmatpush3.bf16.msra.mxu1 %v6611_v11  ;;  %v6635_v10 = vld [vmem:[#allocation8 + $0x490] sm:$0xff]   ;;  %v6636_v11 = vld [vmem:[#allocation8 + $0x458] sm:$0xff]  }
 0x19d   :  { %6187 = vmatprep.subr.bf16.mxu0 %v6612_v12  ;;  %6209 = vmatprep.subr.bf16.mxu1 %v6613_v0  ;;  %v6637_v12 = vld [vmem:[#allocation8 + $0x4d8] sm:$0xff]  }
 0x1a0   :  { %6188 = vmatpush3.bf16.msra.mxu0 %v6614_v13  ;;  %6210 = vmatpush3.bf16.msra.mxu1 %v6615_v15 }
 0x1a1   :  { %6189 = vmatprep.subr.bf16.mxu0 %v6616_v16  ;;  %6211 = vmatprep.subr.bf16.mxu1 %v6617_v19  ;;  %v6638_v16 = vld [vmem:[#allocation8 + $0x418] sm:$0xff]  }
 0x1a2   :  { %v7219_v32 = vpop.f32.mrb[24].mxu0  ;;  %v7224_v35 = vpop.f32.mrb[24].mxu1 }
 0x1a3   :  { %v7222_v34 = vpop.f32.mrb[25].mxu0  ;;  %v7226_v42 = vpop.f32.mrb[25].mxu1 }
 0x1a4   :  { %6190 = vmatpush3.bf16.msra.mxu0 %v6618_v26  ;;  %v1789_v37 = vpop.f32.mrb[26].mxu0  ;;  %6212 = vmatpush3.bf16.msra.mxu1 %v6619_v27  ;;  %v1830_v44 = vpop.f32.mrb[26].mxu1  ;;  %v6641_v27 = vld [vmem:[#allocation8 + $0x4e0] sm:$0xff]  }
 0x1a5   :  { %6191 = vmatprep.subr.bf16.mxu0 %v6620_v28  ;;  %v1790_v21 = vpop.f32.mrb[27].mxu0  ;;  %6213 = vmatprep.subr.bf16.mxu1 %v6621_v31  ;;  %v1831_v55 = vpop.f32.mrb[27].mxu1  ;;  %v6644_v31 = vld [vmem:[#allocation8 + $0x468] sm:$0xff]   ;;  %v6648_v37 = vld [vmem:[#allocation8 + $0x470] sm:$0xff]   ;;  %v350_v44 = vrot.slane %v7206_v14, %v7150_v18 }
 0x1a6   :  { %v6650_v21 = vld [vmem:[#allocation8 + $0x430] sm:$0xff]  }
 0x1a8   :  { %6192 = vmatpush3.bf16.msra.mxu0 %v6622_v36  ;;  %6214 = vmatpush3.bf16.msra.mxu1 %v6623_v51  ;;  %v6647_v36 = vld [vmem:[#allocation8 + $0x4a8] sm:$0xff]   ;;  %v322_v51 = vrot.slane %v7206_v14, %v7127_v47 }
 0x1a9   :  { %6221 = vmatprep.subr.bf16.mxu0 %v6624_v40  ;;  %6243 = vmatprep.subr.bf16.mxu1 %v6625_v41  ;;  %v330_v40 = vrot.slane %v7206_v14, %v7130_v48  ;;  %v342_v41 = vrot.slane %v7206_v14, %v7147_v17 }
 0x1aa   :  { %v1622_v54 = vadd.f32 %v7190_v20, %v322_v51 }
 0x1ab   :  { %4999 = vmatmul.mubr.bf16.vlgmr.msra.gmra.mrb[52].mxu0 %v2131_v60  ;;  %5039 = vmatmul.mubr.bf16.vlgmr.msra.gmra.mrb[52].mxu1 %v2133_v1  ;;  %v1663_v55 = vadd.f32 %v7194_v22, %v330_v40  ;;  %v1747_v1 = vadd.f32 %v7204_v3, %v350_v44  ;;  %v6655_v22 = vld [vmem:[#allocation8 + $0x4b8] sm:$0xff]  }
 0x1ac   :  { %6222 = vmatpush3.bf16.msra.mxu0 %v6626_v9  ;;  %6244 = vmatpush3.bf16.msra.mxu1 %v6627_v56  ;;  %v6652_v9 = vld [vmem:[#allocation8 + $0x478] sm:$0xff]  }
 0x1ad   :  { %6223 = vmatprep.subr.bf16.mxu0 %v6628_v58  ;;  %6245 = vmatprep.subr.bf16.mxu1 %v6629_v59  ;;  %v6653_v56 = vld [vmem:[#allocation8 + $0x4f8] sm:$0xff]   ;;  %v1706_v58 = vadd.f32 %v7200_v45, %v342_v41  ;;  %v6657_v45 = vld [vmem:[#allocation8 + $0x5c0] sm:$0xff]   ;;  %v2102_v3 = vmax.f32 %v1747_v1, 0.0 }
 0x1ae   :  { %5078 = vmatprep.mubr.bf16.mxu0 %v2136_v2  ;;  %5118 = vmatprep.mubr.bf16.mxu1 %v2138_v43  ;;  %v6654_v2 = vld [vmem:[#allocation8 + $0x438] sm:$0xff]   ;;  %v6674_v1 = vld [vmem:[#allocation8 + $0x520] sm:$0xff]  }
 0x1af   :  { %v6670_v41 = vld [vmem:[#allocation8 + $0x518] sm:$0xff]  }
 0x1b0   :  { %6224 = vmatpush3.bf16.msra.mxu0 %v6630_v4  ;;  %6246 = vmatpush3.bf16.msra.mxu1 %v6631_v5  ;;  %v2095_v4 = vmax.f32 %v1622_v54, 0.0  ;;  %v6656_v5 = vld [vmem:[#allocation8 + $0x540] sm:$0xff]  }
 0x1b1   :  { %6225 = vmatprep.subr.bf16.mxu0 %v6632_v46  ;;  %6247 = vmatprep.subr.bf16.mxu1 %v6633_v6 }
 0x1b2   :  { %v7228_v0 = vpop.f32.mrb[28].mxu0  ;;  %v7232_v15 = vpop.f32.mrb[28].mxu1 }
 0x1b3   :  { %v7230_v13 = vpop.f32.mrb[29].mxu0  ;;  %v7234_v7 = vpop.f32.mrb[29].mxu1 }
 0x1b4   :  { %6226 = vmatpush3.bf16.msra.mxu0 %v6634_v8  ;;  %v1871_v19 = vpop.f32.mrb[30].mxu0  ;;  %6248 = vmatpush3.bf16.msra.mxu1 %v6635_v10  ;;  %v1912_v25 = vpop.f32.mrb[30].mxu1  ;;  %v2097_v8 = vmax.f32 %v1663_v55, 0.0  ;;  %v6658_v10 = vld [vmem:[#allocation8 + $0x500] sm:$0xff]  }
 0x1b5   :  { %6227 = vmatprep.subr.bf16.mxu0 %v6636_v11  ;;  %v1872_v26 = vpop.f32.mrb[31].mxu0  ;;  %6249 = vmatprep.subr.bf16.mxu1 %v6637_v12  ;;  %v1913_v28 = vpop.f32.mrb[31].mxu1  ;;  %v2100_v12 = vmax.f32 %v1706_v58, 0.0  ;;  %v6660_v19 = vld [vmem:[#allocation8 + $0x548] sm:$0xff]  }
 0x1b6   :  { %v6661_v25 = vld [vmem:[#allocation8 + $0x5c8] sm:$0xff]   ;;  %v2142_v28 = vpack.c.bf16 %v2102_v3, %v2102_v3 }
 0x1b7   :  { %v2140_v26 = vpack.c.bf16 %v2100_v12, %v2100_v12 }
 0x1b8   :  { %6228 = vmatpush3.bf16.msra.mxu0 %v6638_v16  ;;  %6250 = vmatpush3.bf16.msra.mxu1 %v6639_v23  ;;  %v6659_v16 = vld [vmem:[#allocation8 + $0x580] sm:$0xff]   ;;  %v2135_v23 = vpack.c.bf16 %v2095_v4, %v2095_v4  ;;  %v6677_v4 = vld [vmem:[#allocation8 + $0x5e8] sm:$0xff]  }
 0x1b9   :  { %6229 = vmatprep.subr.bf16.mxu0 %v6640_v24  ;;  %6251 = vmatprep.subr.bf16.mxu1 %v6641_v27  ;;  %v2137_v24 = vpack.c.bf16 %v2097_v8, %v2097_v8  ;;  %v6662_v27 = vld [vmem:[#allocation8 + $0x508] sm:$0xff]   ;;  %v6681_v8 = vld [vmem:[#allocation8 + $0x5f0] sm:$0xff]  }
 0x1bc   :  { %6230 = vmatpush3.bf16.msra.mxu0 %v6642_v29  ;;  %6252 = vmatpush3.bf16.msra.mxu1 %v6643_v30  ;;  %v6663_v29 = vld [vmem:[#allocation8 + $0x588] sm:$0xff]   ;;  %v6664_v30 = vld [vmem:[#allocation8 + $0x550] sm:$0xff]  }
 0x1bd   :  { %6231 = vmatprep.subr.bf16.mxu0 %v6644_v31  ;;  %6253 = vmatprep.subr.bf16.mxu1 %v6645_v62  ;;  %v6665_v31 = vld [vmem:[#allocation8 + $0x5d0] sm:$0xff]  }
 0x1be   :  { %v6666_v62 = vld [vmem:[#allocation8 + $0x510] sm:$0xff]  }
 0x1c0   :  { %6232 = vmatpush3.bf16.msra.mxu0 %v6646_v33  ;;  %6254 = vmatpush3.bf16.msra.mxu1 %v6647_v36  ;;  %v6667_v33 = vld [vmem:[#allocation8 + $0x590] sm:$0xff]   ;;  %v6668_v36 = vld [vmem:[#allocation8 + $0x558] sm:$0xff]  }
 0x1c1   :  { %6233 = vmatprep.subr.bf16.mxu0 %v6648_v37  ;;  %6255 = vmatprep.subr.bf16.mxu1 %v6649_v38  ;;  %v6669_v37 = vld [vmem:[#allocation8 + $0x5d8] sm:$0xff]  }
 0x1c2   :  { %v7246_v57 = vpop.f32.mrb[32].mxu0  ;;  %v7251_v60 = vpop.f32.mrb[32].mxu1 }
 0x1c3   :  { %v7249_v59 = vpop.f32.mrb[33].mxu0  ;;  %v7254_v20 = vpop.f32.mrb[33].mxu1 }
 0x1c4   :  { %6234 = vmatpush3.bf16.msra.mxu0 %v6650_v21  ;;  %v1953_v43 = vpop.f32.mrb[34].mxu0  ;;  %6256 = vmatpush3.bf16.msra.mxu1 %v6651_v52  ;;  %v1994_v6 = vpop.f32.mrb[34].mxu1  ;;  %v6671_v52 = vld [vmem:[#allocation8 + $0x598] sm:$0xff]  }
 0x1c5   :  { %6235 = vmatprep.subr.bf16.mxu0 %v6652_v9  ;;  %v1954_v46 = vpop.f32.mrb[35].mxu0  ;;  %6257 = vmatprep.subr.bf16.mxu1 %v6653_v56  ;;  %v1995_v11 = vpop.f32.mrb[35].mxu1  ;;  %v6672_v9 = vld [vmem:[#allocation8 + $0x560] sm:$0xff]   ;;  %v6676_v43 = vld [vmem:[#allocation8 + $0x568] sm:$0xff]   ;;  %v6680_v6 = vld [vmem:[#allocation8 + $0x570] sm:$0xff]  }
 0x1c6   :  { %v6673_v56 = vld [vmem:[#allocation8 + $0x5e0] sm:$0xff]   ;;  %v6679_v46 = vld [vmem:[#allocation8 + $0x5a8] sm:$0xff]  }
 0x1c8   :  { %6236 = vmatpush3.bf16.msra.mxu0 %v6654_v2  ;;  %6258 = vmatpush3.bf16.msra.mxu1 %v6655_v22  ;;  %v6675_v2 = vld [vmem:[#allocation8 + $0x5a0] sm:$0xff]   ;;  %v7264_v22 = vld [vmem:[#allocation7 + $0x18] sm:$0xff] }
 0x1c9   :  { %6265 = vmatprep.subr.bf16.mxu0 %v6656_v5  ;;  %6287 = vmatprep.subr.bf16.mxu1 %v6657_v45  ;;  %v6678_v5 = vld [vmem:[#allocation8 + $0x528] sm:$0xff]   ;;  %v338_v45 = vrot.slane %v7206_v14, %v7157_v39  ;;  %v358_v11 = vrot.slane %v7264_v22, %v7133_v49  ;;  %v366_v12 = vrot.slane %v7264_v22, %v7136_v50 }
 0x1cb   :  { %5079 = vmatmul.mubr.bf16.vlgmr.msra.gmra.mrb[56].mxu0 %v2135_v23  ;;  %5119 = vmatmul.mubr.bf16.vlgmr.msra.gmra.mrb[56].mxu1 %v2137_v24  ;;  %v1704_v3 = vadd.f32 %v7198_v61, %v338_v45  ;;  %v6684_v23 = vld [vmem:[#allocation8 + $0x578] sm:$0xff]   ;;  %v6707_v45 = vld [vmem:[#allocation8 + $0x6a0] sm:$0xff]  }
 0x1cc   :  { %6266 = vmatpush3.bf16.msra.mxu0 %v6658_v10  ;;  %5158 = vmatprep.mubr.bf16.mxu0 %v2140_v26  ;;  %v346_v10 = vrot.slane %v7206_v14, %v7160_v53  ;;  %v6685_v26 = vld [vmem:[#allocation8 + $0x5f8] sm:$0xff]   ;;  %v1788_v14 = vadd.f32 %v7222_v34, %v358_v11  ;;  %v6691_v34 = vld [vmem:[#allocation8 + $0x680] sm:$0xff]   ;;  %v6709_v11 = vld [vmem:[#allocation8 + $0x6e8] sm:$0xff]  }
 0x1cd   :  { %6288 = vmatpush3.bf16.msra.mxu1 %v6659_v16  ;;  %5198 = vmatprep.mubr.bf16.mxu1 %v2142_v28  ;;  %v6682_v16 = vld [vmem:[#allocation8 + $0x530] sm:$0xff]   ;;  %v2099_v28 = vmax.f32 %v1704_v3, 0.0  ;;  %v6711_v3 = vld [vmem:[#allocation8 + $0x6a8] sm:$0xff]  }
 0x1ce   :  { %6267 = vmatprep.subr.bf16.mxu0 %v6660_v19  ;;  %6289 = vmatprep.subr.bf16.mxu1 %v6661_v25  ;;  %v6683_v19 = vld [vmem:[#allocation8 + $0x5b0] sm:$0xff]   ;;  %v1745_v24 = vadd.f32 %v7202_v63, %v346_v10  ;;  %v1829_v25 = vadd.f32 %v7226_v42, %v366_v12  ;;  %v6690_v63 = vld [vmem:[#allocation8 + $0x600] sm:$0xff]   ;;  %v6692_v42 = vld [vmem:[#allocation8 + $0x648] sm:$0xff]  }
 0x1cf   :  { %v6708_v10 = vld [vmem:[#allocation8 + $0x668] sm:$0xff]  }
 0x1d0   :  { %6268 = vmatpush3.bf16.msra.mxu0 %v6662_v27  ;;  %v6686_v27 = vld [vmem:[#allocation8 + $0x538] sm:$0xff]   ;;  %v2101_v61 = vmax.f32 %v1745_v24, 0.0  ;;  %v6710_v12 = vld [vmem:[#allocation8 + $0x628] sm:$0xff]   ;;  %v6713_v24 = vld [vmem:[#allocation8 + $0x6f0] sm:$0xff]  }
 0x1d1   :  { %6290 = vmatpush3.bf16.msra.mxu1 %v6663_v29  ;;  %6269 = vmatprep.subr.bf16.mxu0 %v6664_v30  ;;  %v6687_v29 = vld [vmem:[#allocation8 + $0x5b8] sm:$0xff]   ;;  %v6688_v30 = vld [vmem:[#allocation8 + $0x640] sm:$0xff]  }
 0x1d2   :  { %6291 = vmatprep.subr.bf16.mxu1 %v6665_v31  ;;  %v7256_v38 = vpop.f32.mrb[36].mxu0  ;;  %v7260_v40 = vpop.f32.mrb[36].mxu1  ;;  %v6689_v31 = vld [vmem:[#allocation8 + $0x6c0] sm:$0xff]  }
 0x1d3   :  { %v7258_v51 = vpop.f32.mrb[37].mxu0  ;;  %v7262_v44 = vpop.f32.mrb[37].mxu1 }
 0x1d4   :  { %6270 = vmatpush3.bf16.msra.mxu0 %v6666_v62  ;;  %v2035_v21 = vpop.f32.mrb[38].mxu0  ;;  %v2076_v55 = vpop.f32.mrb[38].mxu1  ;;  %v2104_v62 = vmax.f32 %v1788_v14, 0.0  ;;  %v382_v14 = vrot.slane %v7264_v22, %v7150_v18 }
 0x1d5   :  { %6292 = vmatpush3.bf16.msra.mxu1 %v6667_v33  ;;  %6271 = vmatprep.subr.bf16.mxu0 %v6668_v36  ;;  %v2036_v54 = vpop.f32.mrb[39].mxu0  ;;  %v2077_v58 = vpop.f32.mrb[39].mxu1  ;;  %v2106_v33 = vmax.f32 %v1829_v25, 0.0  ;;  %v2139_v36 = vpack.c.bf16 %v2099_v28, %v2099_v28  ;;  %v6693_v21 = vld [vmem:[#allocation8 + $0x6c8] sm:$0xff]   ;;  %v6696_v55 = vld [vmem:[#allocation8 + $0x650] sm:$0xff]  }
 0x1d6   :  { %6293 = vmatprep.subr.bf16.mxu1 %v6669_v37  ;;  %v2141_v37 = vpack.c.bf16 %v2101_v61, %v2101_v61  ;;  %v6695_v54 = vld [vmem:[#allocation8 + $0x688] sm:$0xff]   ;;  %v6698_v58 = vld [vmem:[#allocation8 + $0x610] sm:$0xff]   ;;  %v6717_v61 = vld [vmem:[#allocation8 + $0x6f8] sm:$0xff]  }
 0x1d7   :  { %v6714_v25 = vld [vmem:[#allocation8 + $0x630] sm:$0xff]  }
 0x1d8   :  { %6272 = vmatpush3.bf16.msra.mxu0 %v6670_v41  ;;  %v2144_v41 = vpack.c.bf16 %v2104_v62, %v2104_v62  ;;  %v6715_v28 = vld [vmem:[#allocation8 + $0x6b0] sm:$0xff]   ;;  %v1911_v62 = vadd.f32 %v7234_v7, %v382_v14  ;;  %v6724_v7 = vld [vmem:[#allocation8 + $0x748] sm:$0xff]  }
 0x1d9   :  { %6294 = vmatpush3.bf16.msra.mxu1 %v6671_v52  ;;  %6273 = vmatprep.subr.bf16.mxu0 %v6672_v9  ;;  %v2146_v52 = vpack.c.bf16 %v2106_v33, %v2106_v33  ;;  %v6694_v9 = vld [vmem:[#allocation8 + $0x608] sm:$0xff]   ;;  %v6718_v33 = vld [vmem:[#allocation8 + $0x638] sm:$0xff]   ;;  %v6744_v14 = vld [vmem:[#allocation8 + $0x770] sm:$0xff]  }
 0x1da   :  { %6295 = vmatprep.subr.bf16.mxu1 %v6673_v56  ;;  %v6697_v56 = vld [vmem:[#allocation8 + $0x6d0] sm:$0xff]  }
 0x1dc   :  { %6274 = vmatpush3.bf16.msra.mxu0 %v6674_v1  ;;  %v6699_v1 = vld [vmem:[#allocation8 + $0x690] sm:$0xff]  }
 0x1dd   :  { %6296 = vmatpush3.bf16.msra.mxu1 %v6675_v2  ;;  %6275 = vmatprep.subr.bf16.mxu0 %v6676_v43  ;;  %v6700_v2 = vld [vmem:[#allocation8 + $0x658] sm:$0xff]  }
 0x1de   :  { %6297 = vmatprep.subr.bf16.mxu1 %v6677_v4  ;;  %v6701_v43 = vld [vmem:[#allocation8 + $0x6d8] sm:$0xff]  }
 0x1df   :  { %v6702_v4 = vld [vmem:[#allocation8 + $0x618] sm:$0xff]  }
 0x1e0   :  { %6276 = vmatpush3.bf16.msra.mxu0 %v6678_v5  ;;  %v6703_v5 = vld [vmem:[#allocation8 + $0x698] sm:$0xff]  }
 0x1e1   :  { %6298 = vmatpush3.bf16.msra.mxu1 %v6679_v46  ;;  %6277 = vmatprep.subr.bf16.mxu0 %v6680_v6  ;;  %v6704_v46 = vld [vmem:[#allocation8 + $0x660] sm:$0xff]  }
 0x1e2   :  { %6299 = vmatprep.subr.bf16.mxu1 %v6681_v8  ;;  %v6705_v6 = vld [vmem:[#allocation8 + $0x6e0] sm:$0xff]  }
 0x1e3   :  { %v6706_v8 = vld [vmem:[#allocation8 + $0x620] sm:$0xff]  }
 0x1e4   :  { %6278 = vmatpush3.bf16.msra.mxu0 %v6682_v16  ;;  %v354_v16 = vrot.slane %v7264_v22, %v7127_v47 }
 0x1e5   :  { %6300 = vmatpush3.bf16.msra.mxu1 %v6683_v19  ;;  %6279 = vmatprep.subr.bf16.mxu0 %v6684_v23  ;;  %v6712_v19 = vld [vmem:[#allocation8 + $0x670] sm:$0xff]   ;;  %v362_v23 = vrot.slane %v7264_v22, %v7130_v48 }
 0x1e6   :  { %6301 = vmatprep.subr.bf16.mxu1 %v6685_v26  ;;  %v374_v26 = vrot.slane %v7264_v22, %v7147_v17 }
 0x1e8   :  { %6280 = vmatpush3.bf16.msra.mxu0 %v6686_v27  ;;  %v1786_v27 = vadd.f32 %v7219_v32, %v354_v16  ;;  %v6740_v16 = vld [vmem:[#allocation8 + $0x768] sm:$0xff]  }
 0x1e9   :  { %6302 = vmatpush3.bf16.msra.mxu1 %v6687_v29  ;;  %6309 = vmatprep.subr.bf16.mxu0 %v6688_v30  ;;  %v6716_v29 = vld [vmem:[#allocation8 + $0x678] sm:$0xff]   ;;  %v1827_v30 = vadd.f32 %v7224_v35, %v362_v23  ;;  %v6722_v35 = vld [vmem:[#allocation8 + $0x700] sm:$0xff]   ;;  %v6742_v23 = vld [vmem:[#allocation8 + $0x728] sm:$0xff]  }
 0x1ea   :  { %6331 = vmatprep.subr.bf16.mxu1 %v6689_v31  ;;  %v1870_v31 = vadd.f32 %v7230_v13, %v374_v26  ;;  %v6723_v13 = vld [vmem:[#allocation8 + $0x780] sm:$0xff]   ;;  %v6743_v26 = vld [vmem:[#allocation8 + $0x7a8] sm:$0xff]  }
 0x1eb   :  { %5159 = vmatmul.mubr.bf16.vlgmr.msra.gmra.mrb[60].mxu0 %v2139_v36  ;;  %v6719_v36 = vld [vmem:[#allocation8 + $0x6b8] sm:$0xff]   ;;  %v2105_v32 = vmax.f32 %v1827_v30, 0.0 }
 0x1ec   :  { %5199 = vmatmul.mubr.bf16.vlgmr.msra.gmra.mrb[60].mxu1 %v2141_v37  ;;  %6310 = vmatpush3.bf16.msra.mxu0 %v6690_v63  ;;  %v2103_v63 = vmax.f32 %v1786_v27, 0.0  ;;  %v6721_v37 = vld [vmem:[#allocation8 + $0x7c0] sm:$0xff]  }
 0x1ed   :  { %5238 = vmatprep.mubr.bf16.mxu0 %v2144_v41  ;;  %6332 = vmatpush3.bf16.msra.mxu1 %v6691_v34  ;;  %v6720_v34 = vld [vmem:[#allocation8 + $0x740] sm:$0xff]   ;;  %v2110_v41 = vmax.f32 %v1911_v62, 0.0 }
 0x1ee   :  { %5278 = vmatprep.mubr.bf16.mxu1 %v2146_v52  ;;  %6311 = vmatprep.subr.bf16.mxu0 %v6692_v42  ;;  %v2108_v42 = vmax.f32 %v1870_v31, 0.0  ;;  %v2145_v52 = vpack.c.bf16 %v2105_v32, %v2105_v32 }
 0x1ef   :  { %6333 = vmatprep.subr.bf16.mxu1 %v6693_v21  ;;  %v2143_v21 = vpack.c.bf16 %v2103_v63, %v2103_v63 }
 0x1f0   :  { %6312 = vmatpush3.bf16.msra.mxu0 %v6694_v9  ;;  %v2148_v9 = vpack.c.bf16 %v2108_v42, %v2108_v42 }
 0x1f1   :  { %6334 = vmatpush3.bf16.msra.mxu1 %v6695_v54  ;;  %6313 = vmatprep.subr.bf16.mxu0 %v6696_v55  ;;  %v6725_v54 = vld [vmem:[#allocation8 + $0x7c8] sm:$0xff]   ;;  %v2150_v55 = vpack.c.bf16 %v2110_v41, %v2110_v41  ;;  %v6747_v41 = vld [vmem:[#allocation8 + $0x7b0] sm:$0xff]  }
 0x1f2   :  { %6335 = vmatprep.subr.bf16.mxu1 %v6697_v56  ;;  %v6726_v56 = vld [vmem:[#allocation8 + $0x708] sm:$0xff]  }
 0x1f4   :  { %6314 = vmatpush3.bf16.msra.mxu0 %v6698_v58  ;;  %v6727_v58 = vld [vmem:[#allocation8 + $0x788] sm:$0xff]  }
 0x1f5   :  { %6336 = vmatpush3.bf16.msra.mxu1 %v6699_v1  ;;  %6315 = vmatprep.subr.bf16.mxu0 %v6700_v2  ;;  %v6728_v1 = vld [vmem:[#allocation8 + $0x750] sm:$0xff]  }
 0x1f6   :  { %6337 = vmatprep.subr.bf16.mxu1 %v6701_v43  ;;  %v6729_v2 = vld [vmem:[#allocation8 + $0x7d0] sm:$0xff]  }
 0x1f7   :  { %v6730_v43 = vld [vmem:[#allocation8 + $0x710] sm:$0xff]  }
 0x1f8   :  { %6316 = vmatpush3.bf16.msra.mxu0 %v6702_v4  ;;  %v6731_v4 = vld [vmem:[#allocation8 + $0x790] sm:$0xff]  }
 0x1f9   :  { %6338 = vmatpush3.bf16.msra.mxu1 %v6703_v5  ;;  %6317 = vmatprep.subr.bf16.mxu0 %v6704_v46  ;;  %v6732_v5 = vld [vmem:[#allocation8 + $0x758] sm:$0xff]  }
 0x1fa   :  { %6339 = vmatprep.subr.bf16.mxu1 %v6705_v6  ;;  %v6733_v46 = vld [vmem:[#allocation8 + $0x7d8] sm:$0xff]  }
 0x1fb   :  { %v6734_v6 = vld [vmem:[#allocation8 + $0x718] sm:$0xff]  }
 0x1fc   :  { %6318 = vmatpush3.bf16.msra.mxu0 %v6706_v8  ;;  %v6735_v8 = vld [vmem:[#allocation8 + $0x798] sm:$0xff]  }
 0x1fd   :  { %6340 = vmatpush3.bf16.msra.mxu1 %v6707_v45  ;;  %6319 = vmatprep.subr.bf16.mxu0 %v6708_v10  ;;  %v6736_v45 = vld [vmem:[#allocation8 + $0x760] sm:$0xff]  }
 0x1fe   :  { %6341 = vmatprep.subr.bf16.mxu1 %v6709_v11  ;;  %v6737_v10 = vld [vmem:[#allocation8 + $0x7e0] sm:$0xff]  }
 0x1ff   :  { %v6738_v11 = vld [vmem:[#allocation8 + $0x720] sm:$0xff]  }
 0x200   :  { %6320 = vmatpush3.bf16.msra.mxu0 %v6710_v12  ;;  %v6739_v12 = vld [vmem:[#allocation8 + $0x7a0] sm:$0xff]  }
 0x201   :  { %6342 = vmatpush3.bf16.msra.mxu1 %v6711_v3  ;;  %6321 = vmatprep.subr.bf16.mxu0 %v6712_v19  ;;  %v6741_v3 = vld [vmem:[#allocation8 + $0x7e8] sm:$0xff]   ;;  %v7290_v19 = vld [vmem:[#allocation7 + $0x20] sm:$0xff] }
 0x202   :  { %6343 = vmatprep.subr.bf16.mxu1 %v6713_v24  ;;  %v370_v24 = vrot.slane %v7264_v22, %v7157_v39  ;;  %v398_v62 = vrot.slane %v7290_v19, %v7136_v50  ;;  %v6749_v50 = vld [vmem:[#allocation8 + $0x7f8] sm:$0xff]  }
 0x204   :  { %6322 = vmatpush3.bf16.msra.mxu0 %v6714_v25  ;;  %v378_v25 = vrot.slane %v7264_v22, %v7160_v53  ;;  %v1868_v32 = vadd.f32 %v7228_v0, %v370_v24  ;;  %v6750_v0 = vld [vmem:[#allocation8 + $0x738] sm:$0xff]  }
 0x205   :  { %6344 = vmatpush3.bf16.msra.mxu1 %v6715_v28  ;;  %6323 = vmatprep.subr.bf16.mxu0 %v6716_v29  ;;  %v6745_v28 = vld [vmem:[#allocation8 + $0x7f0] sm:$0xff]   ;;  %v390_v29 = vrot.slane %v7290_v19, %v7133_v49  ;;  %v6748_v49 = vld [vmem:[#allocation8 + $0x778] sm:$0xff]  }
 0x206   :  { %6345 = vmatprep.subr.bf16.mxu1 %v6717_v61  ;;  %v5724_v61 = vld [vmem:[#allocation10] ss:$0 sm:$0xff]  ;;  %v6765_v24 = vld [vmem:[#allocation8 + $0x8d8] sm:$0xff]  }
 0x208   :  { %6324 = vmatpush3.bf16.msra.mxu0 %v6718_v33 }
 0x209   :  { %6346 = vmatpush3.bf16.msra.mxu1 %v6719_v36  ;;  %6353 = vmatprep.subr.bf16.mxu0 %v6720_v34  ;;  %v6746_v34 = vld [vmem:[#allocation8 + $0x730] sm:$0xff]  }
 0x20a   :  { %6375 = vmatprep.subr.bf16.mxu1 %v6721_v37 }
 0x20b   :  { %5239 = vmatmul.mubr.bf16.vlgmr.msra.gmra.mrb[64].mxu0 %v2143_v21 }
 0x20c   :  { %5279 = vmatmul.mubr.bf16.vlgmr.msra.gmra.mrb[64].mxu1 %v2145_v52  ;;  %6354 = vmatpush3.bf16.msra.mxu0 %v6722_v35  ;;  %v1909_v35 = vadd.f32 %v7232_v15, %v378_v25  ;;  %v1952_v52 = vadd.f32 %v7249_v59, %v390_v29  ;;  %v6753_v15 = vld [vmem:[#allocation8 + $0x8c0] sm:$0xff]  }
 0x20d   :  { %5318 = vmatprep.mubr.bf16.mxu0 %v2148_v9  ;;  %6376 = vmatpush3.bf16.msra.mxu1 %v6723_v13  ;;  %v6755_v59 = vld [vmem:[#allocation8 + $0x880] sm:$0xff]  }
 0x20e   :  { %5358 = vmatprep.mubr.bf16.mxu1 %v2150_v55  ;;  %6355 = vmatprep.subr.bf16.mxu0 %v6724_v7  ;;  %v1993_v7 = vadd.f32 %v7254_v20, %v398_v62  ;;  %v6751_v55 = vld [vmem:[#allocation8 + $0x7b8] sm:$0xff]   ;;  %v6768_v25 = vld [vmem:[#allocation8 + $0x860] sm:$0xff]   ;;  %v386_v62 = vrot.slane %v7290_v19, %v7127_v47 }
 0x20f   :  { %6377 = vmatprep.subr.bf16.mxu1 %v6725_v54  ;;  %v2107_v54 = vmax.f32 %v1868_v32, 0.0  ;;  %v6771_v29 = vld [vmem:[#allocation8 + $0x8a0] sm:$0xff]   ;;  %v6777_v32 = vld [vmem:[#allocation8 + $0x8f0] sm:$0xff]  }
 0x210   :  { %6356 = vmatpush3.bf16.msra.mxu0 %v6726_v56  ;;  %v6752_v56 = vld [vmem:[#allocation8 + $0x840] sm:$0xff]  }
 0x211   :  { %6378 = vmatpush3.bf16.msra.mxu1 %v6727_v58  ;;  %6357 = vmatprep.subr.bf16.mxu0 %v6728_v1  ;;  %v2109_v58 = vmax.f32 %v1909_v35, 0.0  ;;  %v2112_v1 = vmax.f32 %v1952_v52, 0.0 }
 0x212   :  { %6379 = vmatprep.subr.bf16.mxu1 %v6729_v2  ;;  %v2114_v2 = vmax.f32 %v1993_v7, 0.0  ;;  %v6779_v7 = vld [vmem:[#allocation8 + $0x8b0] sm:$0xff]  }
 0x213   :  { %v2149_v20 = vpack.c.bf16 %v2109_v58, %v2109_v58 }
 0x214   :  { %6358 = vmatpush3.bf16.msra.mxu0 %v6730_v43  ;;  %v6754_v43 = vld [vmem:[#allocation8 + $0x800] sm:$0xff]  }
 0x215   :  { %6380 = vmatpush3.bf16.msra.mxu1 %v6731_v4  ;;  %6359 = vmatprep.subr.bf16.mxu0 %v6732_v5  ;;  %v2147_v4 = vpack.c.bf16 %v2107_v54, %v2107_v54  ;;  %v6756_v5 = vld [vmem:[#allocation8 + $0x848] sm:$0xff]  }
 0x216   :  { %6381 = vmatprep.subr.bf16.mxu1 %v6733_v46  ;;  %v2152_v46 = vpack.c.bf16 %v2112_v1, %v2112_v1 }
 0x218   :  { %6360 = vmatpush3.bf16.msra.mxu0 %v6734_v6  ;;  %v6757_v6 = vld [vmem:[#allocation8 + $0x8c8] sm:$0xff]  }
 0x219   :  { %6382 = vmatpush3.bf16.msra.mxu1 %v6735_v8  ;;  %6361 = vmatprep.subr.bf16.mxu0 %v6736_v45  ;;  %v2154_v8 = vpack.c.bf16 %v2114_v2, %v2114_v2  ;;  %v6758_v45 = vld [vmem:[#allocation8 + $0x808] sm:$0xff]   ;;  %v6783_v2 = vld [vmem:[#allocation8 + $0x8b8] sm:$0xff]  }
 0x21a   :  { %6383 = vmatprep.subr.bf16.mxu1 %v6737_v10  ;;  %v6759_v10 = vld [vmem:[#allocation8 + $0x888] sm:$0xff]  }
 0x21c   :  { %6362 = vmatpush3.bf16.msra.mxu0 %v6738_v11  ;;  %v6760_v11 = vld [vmem:[#allocation8 + $0x850] sm:$0xff]  }
 0x21d   :  { %6384 = vmatpush3.bf16.msra.mxu1 %v6739_v12  ;;  %6363 = vmatprep.subr.bf16.mxu0 %v6740_v16  ;;  %v6761_v12 = vld [vmem:[#allocation8 + $0x8d0] sm:$0xff]  }
 0x21e   :  { %v6061_v27 = vpop.f32.mrb[40].mxu0  ;;  %6385 = vmatprep.subr.bf16.mxu1 %v6741_v3  ;;  %v6083_v30 = vpop.f32.mrb[40].mxu1  ;;  %v6762_v16 = vld [vmem:[#allocation8 + $0x810] sm:$0xff]  }
 0x21f   :  { %v6062_v31 = vpop.f32.mrb[41].mxu0  ;;  %v6084_v63 = vpop.f32.mrb[41].mxu1  ;;  %v6763_v3 = vld [vmem:[#allocation8 + $0x890] sm:$0xff]  }
 0x220   :  { %v6063_v33 = vadd.f32 %v6062_v31, %v6061_v27  ;;  %6364 = vmatpush3.bf16.msra.mxu0 %v6742_v23  ;;  %v6064_v36 = vpop.f32.mrb[42].mxu0  ;;  %v6085_v22 = vadd.f32 %v6084_v63, %v6083_v30  ;;  %v6086_v37 = vpop.f32.mrb[42].mxu1  ;;  %v6764_v23 = vld [vmem:[#allocation8 + $0x858] sm:$0xff]   ;;  %v6769_v27 = vld [vmem:[#allocation8 + $0x8e0] sm:$0xff]   ;;  %v6772_v30 = vld [vmem:[#allocation8 + $0x868] sm:$0xff]  }
 0x221   :  { %6386 = vmatpush3.bf16.msra.mxu1 %v6743_v26  ;;  %v6065_v42 = vpop.f32.mrb[43].mxu0  ;;  %6365 = vmatprep.subr.bf16.mxu0 %v6744_v14  ;;  %v6087_v13 = vpop.f32.mrb[43].mxu1  ;;  %v6766_v26 = vld [vmem:[#allocation8 + $0x818] sm:$0xff]   ;;  %v6774_v31 = vld [vmem:[#allocation8 + $0x828] sm:$0xff]   ;;  %v6776_v63 = vld [vmem:[#allocation8 + $0x870] sm:$0xff]   ;;  %v394_v36 = vrot.slane %v7290_v19, %v7130_v48 }
 0x222   :  { %v4761_v21 = vadd.f32 %v6063_v33, %v5724_v61  ;;  %6387 = vmatprep.subr.bf16.mxu1 %v6745_v28  ;;  %v6767_v14 = vld [vmem:[#allocation8 + $0x898] sm:$0xff]   ;;  %v6770_v28 = vld [vmem:[#allocation8 + $0x820] sm:$0xff]   ;;  %v6773_v61 = vld [vmem:[#allocation8 + $0x8e8] sm:$0xff]   ;;  %v1950_v13 = vadd.f32 %v7246_v57, %v386_v62 }
 0x223   :  { %v6775_v33 = vld [vmem:[#allocation8 + $0x8a8] sm:$0xff]   ;;  %v6782_v57 = vld [vmem:[#allocation8 + $0x838] sm:$0xff]  }
 0x224   :  { %v7304_v9 = vadd.f32 %v6085_v22, %v4761_v21  ;;  %6366 = vmatpush3.bf16.msra.mxu0 %v6746_v34  ;;  %v406_v22 = vrot.slane %v7290_v19, %v7147_v17  ;;  %v6778_v21 = vld [vmem:[#allocation8 + $0x830] sm:$0xff]   ;;  %v1991_v17 = vadd.f32 %v7251_v60, %v394_v36  ;;  %v2111_v1 = vmax.f32 %v1950_v13, 0.0  ;;  %v6785_v60 = vld [vmem:[#allocation8 + $0x9c0] sm:$0xff]   ;;  %v6806_v62 = vld [vmem:[#allocation8 + $0x928] sm:$0xff]  }
 0x225   :  { %6388 = vmatpush3.bf16.msra.mxu1 %v6747_v41  ;;  %6367 = vmatprep.subr.bf16.mxu0 %v6748_v49  ;;  %v414_v41 = vrot.slane %v7290_v19, %v7150_v18  ;;  %v6781_v18 = vld [vmem:[#allocation8 + $0x8f8] sm:$0xff]   ;;  %v6808_v36 = vld [vmem:[#allocation8 + $0x970] sm:$0xff]  }
 0x226   :  { %6389 = vmatprep.subr.bf16.mxu1 %v6749_v50 }
 0x227   :  { %v2075_v58 = vadd.f32 %v7262_v44, %v414_v41 }
 0x228   :  { %6368 = vmatpush3.bf16.msra.mxu0 %v6750_v0  ;;  %v6780_v0 = vld [vmem:[#allocation8 + $0x878] sm:$0xff]  }
 0x229   :  { %6390 = vmatpush3.bf16.msra.mxu1 %v6751_v55  ;;  %6397 = vmatprep.subr.bf16.mxu0 %v6752_v56  ;;  %v2034_v56 = vadd.f32 %v7258_v51, %v406_v22  ;;  %v6787_v51 = vld [vmem:[#allocation8 + $0x980] sm:$0xff]   ;;  %v6809_v22 = vld [vmem:[#allocation8 + $0x9f0] sm:$0xff]  }
 0x22a   :  { %6419 = vmatprep.subr.bf16.mxu1 %v6753_v15 }
 0x22b   :  { %5319 = vmatmul.mubr.bf16.vlgmr.msra.gmra.mrb[68].mxu0 %v2147_v4  ;;  %v2113_v4 = vmax.f32 %v1991_v17, 0.0 }
 0x22c   :  { %5359 = vmatmul.mubr.bf16.vlgmr.msra.gmra.mrb[68].mxu1 %v2149_v20  ;;  %6398 = vmatpush3.bf16.msra.mxu0 %v6754_v43  ;;  %v6784_v43 = vld [vmem:[#allocation8 + $0x940] sm:$0xff]  }
 0x22d   :  { %5398 = vmatprep.mubr.bf16.mxu0 %v2152_v46  ;;  %6420 = vmatpush3.bf16.msra.mxu1 %v6755_v59  ;;  %v2118_v59 = vmax.f32 %v2075_v58, 0.0  ;;  %v6786_v20 = vld [vmem:[#allocation8 + $0x900] sm:$0xff]   ;;  %v2153_v44 = vpack.c.bf16 %v2113_v4, %v2113_v4  ;;  %v6788_v46 = vld [vmem:[#allocation8 + $0x948] sm:$0xff]  }
 0x22e   :  { %5438 = vmatprep.mubr.bf16.mxu1 %v2154_v8  ;;  %6399 = vmatprep.subr.bf16.mxu0 %v6756_v5  ;;  %v2151_v5 = vpack.c.bf16 %v2111_v1, %v2111_v1  ;;  %v6789_v8 = vld [vmem:[#allocation8 + $0x9c8] sm:$0xff]  }
 0x22f   :  { %6421 = vmatprep.subr.bf16.mxu1 %v6757_v6 }
 0x230   :  { %6400 = vmatpush3.bf16.msra.mxu0 %v6758_v45  ;;  %v2158_v45 = vpack.c.bf16 %v2118_v59, %v2118_v59 }
 0x231   :  { %6422 = vmatpush3.bf16.msra.mxu1 %v6759_v10  ;;  %6401 = vmatprep.subr.bf16.mxu0 %v6760_v11  ;;  %v6790_v10 = vld [vmem:[#allocation8 + $0x908] sm:$0xff]  }
 0x232   :  { %6423 = vmatprep.subr.bf16.mxu1 %v6761_v12  ;;  %v6791_v11 = vld [vmem:[#allocation8 + $0x988] sm:$0xff]   ;;  %v6792_v12 = vld [vmem:[#allocation8 + $0x950] sm:$0xff]  }
 0x234   :  { %6402 = vmatpush3.bf16.msra.mxu0 %v6762_v16  ;;  %v6793_v16 = vld [vmem:[#allocation8 + $0x9d0] sm:$0xff]  }
 0x235   :  { %6424 = vmatpush3.bf16.msra.mxu1 %v6763_v3  ;;  %6403 = vmatprep.subr.bf16.mxu0 %v6764_v23  ;;  %v6794_v3 = vld [vmem:[#allocation8 + $0x910] sm:$0xff]  }
 0x236   :  { %6425 = vmatprep.subr.bf16.mxu1 %v6765_v24  ;;  %v6795_v23 = vld [vmem:[#allocation8 + $0x990] sm:$0xff]   ;;  %v6796_v24 = vld [vmem:[#allocation8 + $0x958] sm:$0xff]  }
 0x238   :  { %6404 = vmatpush3.bf16.msra.mxu0 %v6766_v26  ;;  %v6797_v26 = vld [vmem:[#allocation8 + $0x9d8] sm:$0xff]  }
 0x239   :  { %6426 = vmatpush3.bf16.msra.mxu1 %v6767_v14  ;;  %6405 = vmatprep.subr.bf16.mxu0 %v6768_v25  ;;  %v6798_v14 = vld [vmem:[#allocation8 + $0x918] sm:$0xff]  }
 0x23a   :  { %6427 = vmatprep.subr.bf16.mxu1 %v6769_v27  ;;  %v6799_v25 = vld [vmem:[#allocation8 + $0x998] sm:$0xff]   ;;  %v6800_v27 = vld [vmem:[#allocation8 + $0x960] sm:$0xff]  }
 0x23c   :  { %6406 = vmatpush3.bf16.msra.mxu0 %v6770_v28  ;;  %v6801_v28 = vld [vmem:[#allocation8 + $0x9e0] sm:$0xff]  }
 0x23d   :  { %6428 = vmatpush3.bf16.msra.mxu1 %v6771_v29  ;;  %6407 = vmatprep.subr.bf16.mxu0 %v6772_v30  ;;  %v6802_v29 = vld [vmem:[#allocation8 + $0x920] sm:$0xff]  }
 0x23e   :  { %v6105_v34 = vpop.f32.mrb[44].mxu0  ;;  %6429 = vmatprep.subr.bf16.mxu1 %v6773_v61  ;;  %v6127_v37 = vpop.f32.mrb[44].mxu1  ;;  %v6803_v30 = vld [vmem:[#allocation8 + $0x9a0] sm:$0xff]   ;;  %v6804_v61 = vld [vmem:[#allocation8 + $0x968] sm:$0xff]  }
 0x23f   :  { %v6106_v42 = vpop.f32.mrb[45].mxu0  ;;  %v6128_v47 = vpop.f32.mrb[45].mxu1 }
 0x240   :  { %v6107_v49 = vadd.f32 %v6106_v42, %v6105_v34  ;;  %v6108_v35 = vpop.f32.mrb[46].mxu0  ;;  %6408 = vmatpush3.bf16.msra.mxu0 %v6774_v31  ;;  %v6129_v50 = vadd.f32 %v6128_v47, %v6127_v37  ;;  %v6130_v48 = vpop.f32.mrb[46].mxu1  ;;  %v6805_v31 = vld [vmem:[#allocation8 + $0x9e8] sm:$0xff]   ;;  %v410_v34 = vrot.slane %v7290_v19, %v7160_v53 }
 0x241   :  { %6430 = vmatpush3.bf16.msra.mxu1 %v6775_v33  ;;  %v6109_v52 = vpop.f32.mrb[47].mxu0  ;;  %6409 = vmatprep.subr.bf16.mxu0 %v6776_v63  ;;  %v6131_v55 = vpop.f32.mrb[47].mxu1  ;;  %v402_v33 = vrot.slane %v7290_v19, %v7157_v39  ;;  %v6807_v63 = vld [vmem:[#allocation8 + $0x9a8] sm:$0xff]   ;;  %v6810_v35 = vld [vmem:[#allocation8 + $0x930] sm:$0xff]  }
 0x242   :  { %v4841_v54 = vadd.f32 %v6107_v49, %v7304_v9  ;;  %6431 = vmatprep.subr.bf16.mxu1 %v6777_v32  ;;  %v2116_v9 = vmax.f32 %v2034_v56, 0.0  ;;  %v6811_v48 = vld [vmem:[#allocation8 + $0x9b0] sm:$0xff]   ;;  %v6812_v52 = vld [vmem:[#allocation8 + $0x978] sm:$0xff]   ;;  %v2073_v53 = vadd.f32 %v7260_v40, %v410_v34 }
 0x244   :  { %v7319_v15 = vadd.f32 %v6129_v50, %v4841_v54  ;;  %6410 = vmatpush3.bf16.msra.mxu0 %v6778_v21  ;;  %v2156_v6 = vpack.c.bf16 %v2116_v9, %v2116_v9  ;;  %v2032_v21 = vadd.f32 %v7256_v38, %v402_v33  ;;  %v6814_v54 = vld [vmem:[#allocation8 + $0x938] sm:$0xff]  }
 0x245   :  { %6432 = vmatpush3.bf16.msra.mxu1 %v6779_v7  ;;  %6411 = vmatprep.subr.bf16.mxu0 %v6780_v0  ;;  %v6813_v0 = vld [vmem:[#allocation8 + $0x9f8] sm:$0xff]  }
 0x246   :  { %6433 = vmatprep.subr.bf16.mxu1 %v6781_v18  ;;  %v2115_v55 = vmax.f32 %v2032_v21, 0.0  ;;  %v6815_v38 = vld [vmem:[#allocation8 + $0x9b8] sm:$0xff]   ;;  %v2117_v18 = vmax.f32 %v2073_v53, 0.0 }
 0x248   :  { %6412 = vmatpush3.bf16.msra.mxu0 %v6782_v57  ;;  %v2155_v56 = vpack.c.bf16 %v2115_v55, %v2115_v55  ;;  %v2157_v58 = vpack.c.bf16 %v2117_v18, %v2117_v18 }
 0x249   :  { %6434 = vmatpush3.bf16.msra.mxu1 %v6783_v2  ;;  %6441 = vmatprep.subr.bf16.mxu0 %v6784_v43 }
 0x24a   :  { %6463 = vmatprep.subr.bf16.mxu1 %v6785_v60 }
 0x24b   :  { %5399 = vmatmul.mubr.bf16.vlgmr.msra.gmra.mrb[72].mxu0 %v2151_v5 }
 0x24c   :  { %5439 = vmatmul.mubr.bf16.vlgmr.msra.gmra.mrb[72].mxu1 %v2153_v44  ;;  %6442 = vmatpush3.bf16.msra.mxu0 %v6786_v20 }
 0x24d   :  { %5478 = vmatprep.mubr.bf16.mxu0 %v2156_v6  ;;  %6464 = vmatpush3.bf16.msra.mxu1 %v6787_v51 }
 0x24e   :  { %5518 = vmatprep.mubr.bf16.mxu1 %v2158_v45  ;;  %6443 = vmatprep.subr.bf16.mxu0 %v6788_v46 }
 0x24f   :  { %6465 = vmatprep.subr.bf16.mxu1 %v6789_v8 }
 0x250   :  { %6444 = vmatpush3.bf16.msra.mxu0 %v6790_v10 }
 0x251   :  { %6466 = vmatpush3.bf16.msra.mxu1 %v6791_v11  ;;  %6445 = vmatprep.subr.bf16.mxu0 %v6792_v12 }
 0x252   :  { %6467 = vmatprep.subr.bf16.mxu1 %v6793_v16 }
 0x254   :  { %6446 = vmatpush3.bf16.msra.mxu0 %v6794_v3 }
 0x255   :  { %6468 = vmatpush3.bf16.msra.mxu1 %v6795_v23  ;;  %6447 = vmatprep.subr.bf16.mxu0 %v6796_v24 }
 0x256   :  { %6469 = vmatprep.subr.bf16.mxu1 %v6797_v26 }
 0x258   :  { %6448 = vmatpush3.bf16.msra.mxu0 %v6798_v14 }
 0x259   :  { %6470 = vmatpush3.bf16.msra.mxu1 %v6799_v25  ;;  %6449 = vmatprep.subr.bf16.mxu0 %v6800_v27 }
 0x25a   :  { %6471 = vmatprep.subr.bf16.mxu1 %v6801_v28 }
 0x25c   :  { %6450 = vmatpush3.bf16.msra.mxu0 %v6802_v29 }
 0x25d   :  { %6472 = vmatpush3.bf16.msra.mxu1 %v6803_v30  ;;  %6451 = vmatprep.subr.bf16.mxu0 %v6804_v61 }
 0x25e   :  { %v6149_v32 = vpop.f32.mrb[48].mxu0  ;;  %6473 = vmatprep.subr.bf16.mxu1 %v6805_v31  ;;  %v6171_v37 = vpop.f32.mrb[48].mxu1 }
 0x25f   :  { %v6150_v42 = vpop.f32.mrb[49].mxu0  ;;  %v6172_v49 = vpop.f32.mrb[49].mxu1 }
 0x260   :  { %v6151_v41 = vadd.f32 %v6150_v42, %v6149_v32  ;;  %v6152_v47 = vpop.f32.mrb[50].mxu0  ;;  %6452 = vmatpush3.bf16.msra.mxu0 %v6806_v62  ;;  %v6173_v39 = vadd.f32 %v6172_v49, %v6171_v37  ;;  %v6174_v13 = vpop.f32.mrb[50].mxu1 }
 0x261   :  { %6474 = vmatpush3.bf16.msra.mxu1 %v6807_v63  ;;  %v6153_v50 = vpop.f32.mrb[51].mxu0  ;;  %6453 = vmatprep.subr.bf16.mxu0 %v6808_v36  ;;  %v6175_v7 = vpop.f32.mrb[51].mxu1 }
 0x262   :  { %v4921_v19 = vadd.f32 %v6151_v41, %v7319_v15  ;;  %6475 = vmatprep.subr.bf16.mxu1 %v6809_v22 }
 0x264   :  { %v4961_v17 = vadd.f32 %v6173_v39, %v4921_v19  ;;  %6454 = vmatpush3.bf16.msra.mxu0 %v6810_v35 }
 0x265   :  { %6476 = vmatpush3.bf16.msra.mxu1 %v6811_v48  ;;  %6455 = vmatprep.subr.bf16.mxu0 %v6812_v52 }
 0x266   :  { %6477 = vmatprep.subr.bf16.mxu1 %v6813_v0 }
 0x268   :  { %6456 = vmatpush3.bf16.msra.mxu0 %v6814_v54 }
 0x269   :  { %6478 = vmatpush3.bf16.msra.mxu1 %v6815_v38 }
 0x26b   :  { %5479 = vmatmul.mubr.bf16.vlgmr.msra.gmra.mrb[76].mxu0 %v2155_v56 }
 0x26c   :  { %5519 = vmatmul.mubr.bf16.vlgmr.msra.gmra.mrb[76].mxu1 %v2157_v58 }
 0x27e   :  { %v6193_v40 = vpop.f32.mrb[52].mxu0  ;;  %v6215_v15 = vpop.f32.mrb[52].mxu1 }
 0x27f   :  { %v6194_v57 = vpop.f32.mrb[53].mxu0  ;;  %v6216_v2 = vpop.f32.mrb[53].mxu1 }
 0x280   :  { %v6195_v1 = vadd.f32 %v6194_v57, %v6193_v40  ;;  %v6196_v43 = vpop.f32.mrb[54].mxu0  ;;  %v6217_v4 = vadd.f32 %v6216_v2, %v6215_v15  ;;  %v6218_v60 = vpop.f32.mrb[54].mxu1 }
 0x281   :  { %v6197_v9 = vpop.f32.mrb[55].mxu0  ;;  %v6219_v20 = vpop.f32.mrb[55].mxu1 }
 0x282   :  { %v5001_v59 = vadd.f32 %v6195_v1, %v4961_v17 }
 0x284   :  { %v5041_v5 = vadd.f32 %v6217_v4, %v5001_v59 }
 0x29e   :  { %v6237_v51 = vpop.f32.mrb[56].mxu0  ;;  %v6259_v44 = vpop.f32.mrb[56].mxu1 }
 0x29f   :  { %v6238_v46 = vpop.f32.mrb[57].mxu0  ;;  %v6260_v8 = vpop.f32.mrb[57].mxu1 }
 0x2a0   :  { %v6239_v6 = vadd.f32 %v6238_v46, %v6237_v51  ;;  %v6240_v45 = vpop.f32.mrb[58].mxu0  ;;  %v6261_v10 = vadd.f32 %v6260_v8, %v6259_v44  ;;  %v6262_v11 = vpop.f32.mrb[58].mxu1 }
 0x2a1   :  { %v6241_v12 = vpop.f32.mrb[59].mxu0  ;;  %v6263_v3 = vpop.f32.mrb[59].mxu1 }
 0x2a2   :  { %v5081_v16 = vadd.f32 %v6239_v6, %v5041_v5 }
 0x2a4   :  { %v5121_v23 = vadd.f32 %v6261_v10, %v5081_v16 }
 0x2be   :  { %v6281_v24 = vpop.f32.mrb[60].mxu0 }
 0x2bf   :  { %v6303_v26 = vpop.f32.mrb[60].mxu1  ;;  %v6282_v14 = vpop.f32.mrb[61].mxu0 }
 0x2c0   :  { %v6283_v25 = vadd.f32 %v6282_v14, %v6281_v24  ;;  %v6304_v27 = vpop.f32.mrb[61].mxu1  ;;  %v6284_v28 = vpop.f32.mrb[62].mxu0 }
 0x2c1   :  { %v6305_v29 = vadd.f32 %v6304_v27, %v6303_v26  ;;  %v6306_v30 = vpop.f32.mrb[62].mxu1  ;;  %v6285_v61 = vpop.f32.mrb[63].mxu0 }
 0x2c2   :  { %v5161_v31 = vadd.f32 %v6283_v25, %v5121_v23  ;;  %v6307_v62 = vpop.f32.mrb[63].mxu1 }
 0x2c4   :  { %v5201_v33 = vadd.f32 %v6305_v29, %v5161_v31 }
 0x2de   :  { %v6325_v63 = vpop.f32.mrb[64].mxu0 }
 0x2df   :  { %v6347_v36 = vpop.f32.mrb[64].mxu1  ;;  %v6326_v34 = vpop.f32.mrb[65].mxu0 }
 0x2e0   :  { %v6327_v32 = vadd.f32 %v6326_v34, %v6325_v63  ;;  %v6348_v22 = vpop.f32.mrb[65].mxu1  ;;  %v6328_v37 = vpop.f32.mrb[66].mxu0 }
 0x2e1   :  { %v6349_v42 = vadd.f32 %v6348_v22, %v6347_v36  ;;  %v6350_v41 = vpop.f32.mrb[66].mxu1  ;;  %v6329_v49 = vpop.f32.mrb[67].mxu0 }
 0x2e2   :  { %v5241_v47 = vadd.f32 %v6327_v32, %v5201_v33  ;;  %v6351_v35 = vpop.f32.mrb[67].mxu1 }
 0x2e4   :  { %v5281_v21 = vadd.f32 %v6349_v42, %v5241_v47 }
 0x2fe   :  { %v6369_v39 = vpop.f32.mrb[68].mxu0 }
 0x2ff   :  { %v6391_v13 = vpop.f32.mrb[68].mxu1  ;;  %v6370_v50 = vpop.f32.mrb[69].mxu0 }
 0x300   :  { %v6371_v48 = vadd.f32 %v6370_v50, %v6369_v39  ;;  %v6392_v52 = vpop.f32.mrb[69].mxu1  ;;  %v6372_v53 = vpop.f32.mrb[70].mxu0 }
 0x301   :  { %v6393_v19 = vadd.f32 %v6392_v52, %v6391_v13  ;;  %v6394_v7 = vpop.f32.mrb[70].mxu1  ;;  %v6373_v0 = vpop.f32.mrb[71].mxu0 }
 0x302   :  { %v5321_v17 = vadd.f32 %v6371_v48, %v5281_v21  ;;  %v6395_v54 = vpop.f32.mrb[71].mxu1 }
 0x304   :  { %v5361_v55 = vadd.f32 %v6393_v19, %v5321_v17 }
 0x31e   :  { %v6413_v38 = vpop.f32.mrb[72].mxu0 }
 0x31f   :  { %v6435_v18 = vpop.f32.mrb[72].mxu1  ;;  %v6414_v56 = vpop.f32.mrb[73].mxu0 }
 0x320   :  { %v6415_v58 = vadd.f32 %v6414_v56, %v6413_v38  ;;  %v6436_v40 = vpop.f32.mrb[73].mxu1  ;;  %v6416_v15 = vpop.f32.mrb[74].mxu0 }
 0x321   :  { %v6437_v57 = vadd.f32 %v6436_v40, %v6435_v18  ;;  %v6438_v1 = vpop.f32.mrb[74].mxu1  ;;  %v6417_v2 = vpop.f32.mrb[75].mxu0 }
 0x322   :  { %v5401_v43 = vadd.f32 %v6415_v58, %v5361_v55  ;;  %v6439_v4 = vpop.f32.mrb[75].mxu1 }
 0x324   :  { %v5441_v60 = vadd.f32 %v6437_v57, %v5401_v43 }
 0x33e   :  { %v6457_v9 = vpop.f32.mrb[76].mxu0 }
 0x33f   :  { %v6479_v59 = vpop.f32.mrb[76].mxu1  ;;  %v6458_v20 = vpop.f32.mrb[77].mxu0 }
 0x340   :  { %v6459_v5 = vadd.f32 %v6458_v20, %v6457_v9  ;;  %v6480_v51 = vpop.f32.mrb[77].mxu1  ;;  %v6460_v44 = vpop.f32.mrb[78].mxu0 }
 0x341   :  { %v6481_v46 = vadd.f32 %v6480_v51, %v6479_v59  ;;  %v6482_v6 = vpop.f32.mrb[78].mxu1  ;;  %v6461_v8 = vpop.f32.mrb[79].mxu0 }
 0x342   :  { %v5481_v45 = vadd.f32 %v6459_v5, %v5441_v60  ;;  %v6483_v10 = vpop.f32.mrb[79].mxu1 }
 0x344   :  { %v5521_v11 = vadd.f32 %v6481_v46, %v5481_v45 }
 0x346   :  { %5526 = vst [vmem:[#allocation11] sm:$0xff] %v5521_v11 }
 0x347   :  { %6938 = shalt.err (!%p6935_p2)
}
 0x348   :  { %s6939_s6 = scalar_lea.hbm %s7345_s5, 128 }
 0x349   :  { %p6940_p3 = scmp.ne.s32.totalorder %s7345_s5, %s6939_s6  ;;  %p6943_p4 = scmp.lt.u32.totalorder %s6939_s6, %s7345_s5 }
 0x34b   :  { %p6945_p5 = pnand %p6943_p4, %p6940_p3 }
 0x34d   :  { %6948 = shalt.err (!%p6945_p5)
}
 0x34e   :  { %5536 = dma.vmem_to_hbm [thread:$0]  %s5534_s28, 128, %s7345_s5, [#allocation4]  }
 0x34f   :  { %6955 = dma.done.wait [#allocation4], 128  }
 0x350   :  { %6956 = vsyncadd [#allocation4], 4294967168 }
 0x351   :  { %5540 = vsyncpa [#allocation3], 1 }
 0x352   :  { %5541 = vsyncpa [#allocation6], 1 }
 0x353   :  { %5542 = vsyncpa [#allocation9], 1 }
 0x354   :  { %5543 = vsyncpa [#allocation4], 1 }

</bundles_post_ra>
